<compile_context>
chip_gen: v7x
topology: tpu7x:2x2x1
jax: 0.10.0
libtpu: 0.0.40
codegen_flags: <defaults>
</compile_context>

<pallas_src>
import jax
import jax.numpy as jnp
from jax.experimental import pallas as pl
from jax.experimental.pallas import tpu as pltpu

# ---- module hyper-parameters (down_conv_nn=[4, 8]) -------------------------
N = 64            # number of points
CIN = 4           # num_inputs
COUT = 8          # num_outputs
K = 16            # max_num_neighbors
P = 15            # n_kernel_points (KPConv default)
RADIUS = 0.4
KP_EXTENT = 1.0
DENSITY = 1.0
SIGMA = KP_EXTENT * RADIUS / DENSITY        # point_influence of KPConvLayer
INV_SIGMA = 1.0 / SIGMA
KERNEL_RADIUS = 1.5 * SIGMA                 # _INFLUENCE_TO_RADIUS * sigma
BN_EPS = 1e-5
NEG_SLOPE = 0.2


# ---------------------------------------------------------------------------
# Fused kernel: KPConv (linear influence, "sum" aggregation) + BN + LeakyReLU
# ---------------------------------------------------------------------------
def simple_block_kernel(dd_ref, feat_ref, kp_ref, w_ref, gamma_ref, beta_ref, o_ref):
    dd = dd_ref[...]        # [3, K, N]  neighbor - query coordinate planes (N on lanes)
    kp = kp_ref[...]        # [3, P, 1]  kernel point coords as sublane columns

    # ---- KPConv linear influence, computed at P width (not P*CIN) ----------
    # [K, 1, N] - [P, 1]  (numpy broadcast)  -> [K, P, N] : P on sublanes, N on lanes.
    ddx = dd[0][:, None, :] - kp[0]
    ddy = dd[1][:, None, :] - kp[1]
    ddz = dd[2][:, None, :] - kp[2]
    sqd = ddx * ddx + ddy * ddy + ddz * ddz                      # [K, P, N]
    # clamp(1 - dist/sigma, 0); shadow neighbors (dist ~ 1e6) clamp to 0.
    infl = jnp.maximum(1.0 - jnp.sqrt(sqd) * INV_SIGMA, 0.0)     # EUP sqrt on P-wide tiles

    # ---- influence-weighted aggregation + convolution -----------------------
    # K leading => sum over axis 0 is plain VALU adds of [P, N] tiles (no sublane reduce);
    # wf_c is already [P(sublane), N(lane)], i.e. the natural MXU RHS.
    acc = jnp.zeros((COUT, N), jnp.float32)
    for c in range(CIN):                                         # static unroll (CIN=4)
        fc = feat_ref[c][:, None, :]                             # [K, 1, N]
        wf_c = jnp.sum(infl * fc, axis=0)                        # [P, N]
        acc = acc + jnp.dot(w_ref[c], wf_c,                      # [COUT,P] x [P,N]
                            preferred_element_type=jnp.float32)  # -> [COUT, N]

    # ---- BatchNorm1d (training-mode batch statistics, biased var) + LeakyReLU
    mean = jnp.mean(acc, axis=1, keepdims=True)                  # [COUT, 1]
    var = jnp.mean((acc - mean) ** 2, axis=1, keepdims=True)
    yn = (acc - mean) * jax.lax.rsqrt(var + BN_EPS)
    z = yn * gamma_ref[...] + beta_ref[...]
    o_ref[...] = jnp.where(z > 0, z, NEG_SLOPE * z)              # [COUT, N]


def simple_block_pallas(dd, feat, kp, w, gamma, beta):
    vmem = pl.BlockSpec(memory_space=pltpu.MemorySpace.VMEM)
    return pl.pallas_call(
        simple_block_kernel,
        out_shape=jax.ShapeDtypeStruct((COUT, N), jnp.float32),
        in_specs=[vmem] * 6,
        out_specs=vmem,
    )(dd, feat, kp, w, gamma, beta)


# ---------------------------------------------------------------------------
# Plain-JAX glue: RadiusNeighbourFinder + shadow padding + gather + reshapes
# ---------------------------------------------------------------------------
def radius_neighbors(q_pos, s_pos, radius, max_k):
    # K nearest-by-distance neighbors within radius; shadow index == n_s.
    n_s = s_pos.shape[0]
    d2 = jnp.sum((q_pos[:, None, :] - s_pos[None, :, :]) ** 2, axis=-1)
    d2m = jnp.where(d2 <= radius * radius, d2, jnp.inf)
    order = jnp.argsort(d2m, axis=1)[:, :max_k]
    dsel = jnp.take_along_axis(d2m, order, axis=1)
    return jnp.where(jnp.isfinite(dsel), order, n_s).astype(jnp.int32)


def simple_block_forward(pos, x, kpts, weight, gamma, beta):
    # TODO(synk): GridSampling (voxel subsampling of query points) not
    # implemented; this is the grid_size=None path (queries == support).
    q_pos = pos
    idx = radius_neighbors(q_pos, pos, RADIUS, K)                 # [N, K]

    shadow_pos = jnp.full((1, 3), 1e6, jnp.float32)               # shadow point
    pos_pad = jnp.concatenate([pos, shadow_pos], axis=0)          # [N+1, 3]
    feat_pad = jnp.concatenate([x, jnp.zeros((1, CIN), jnp.float32)], axis=0)

    # TODO(synk): neighbor gather stays in XLA glue (an in-kernel scalar-prefetch
    # gather would need a per-row grid; the O(N^2) radius search dominates anyway).
    diff = pos_pad[idx] - q_pos[:, None, :]                       # [N, K, 3]
    dd = jnp.transpose(diff, (2, 1, 0))                           # [3, K, N]   lane-dense planes
    feat = jnp.transpose(feat_pad[idx], (2, 1, 0))                # [CIN, K, N] raw (untiled) feats

    kp = jnp.transpose(kpts)[:, :, None]                          # [3, P, 1]
    w_r = jnp.transpose(weight, (1, 2, 0))                        # [CIN, COUT, P]
    gamma_c = gamma.reshape(COUT, 1)
    beta_c = beta.reshape(COUT, 1)

    y = simple_block_pallas(dd, feat, kp, w_r, gamma_c, beta_c)   # [COUT, N]
    return y.T                                                    # [N, COUT]


if __name__ == "__main__":
    key = jax.random.PRNGKey(0)
    kpos, kfeat, kw, kkp = jax.random.split(key, 4)

    # deterministic synthetic point cloud (single batch of N points)
    pos = jax.random.uniform(kpos, (N, 3), jnp.float32)
    x = jax.random.normal(kfeat, (N, CIN), jnp.float32)

    # KPConv weight [P, Cin, Cout], xavier_normal-style deterministic init
    std = (2.0 / (CIN * COUT + P * COUT)) ** 0.5
    weight = std * jax.random.normal(kw, (P, CIN, COUT), jnp.float32)

    # TODO(synk): KPConv's load_kernels() repulsion-optimized kernel-point
    # dispositions replaced by deterministic synthetic points (center fixed).
    kp_dir = jax.random.uniform(kkp, (P - 1, 3), jnp.float32, -1.0, 1.0)
    kp_dir = kp_dir / jnp.maximum(
        jnp.linalg.norm(kp_dir, axis=-1, keepdims=True), 1e-6)
    radii = jnp.linspace(0.3, 1.0, P - 1, dtype=jnp.float32)[:, None]
    kpts = jnp.concatenate(
        [jnp.zeros((1, 3), jnp.float32), KERNEL_RADIUS * kp_dir * radii], axis=0)

    # BatchNorm1d affine params (default init)
    gamma = jnp.ones((COUT,), jnp.float32)
    beta = jnp.zeros((COUT,), jnp.float32)

    out = simple_block_forward(pos, x, kpts, weight, gamma, beta)
    out = jax.block_until_ready(out)
    assert out.shape == (N, COUT) and out.dtype == jnp.float32
    assert bool(jnp.all(jnp.isfinite(out)))
    print("KERNEL_OK")
</pallas_src>

<mosaic_0001>
module attributes {stable_mosaic.version = 11 : i64} {
  func.func @simple_block_kernel(%arg0: memref<3x16x64xf32, #tpu.memory_space<vmem>>, %arg1: memref<4x16x64xf32, #tpu.memory_space<vmem>>, %arg2: memref<3x15x1xf32, #tpu.memory_space<vmem>>, %arg3: memref<4x8x15xf32, #tpu.memory_space<vmem>>, %arg4: memref<8x1xf32, #tpu.memory_space<vmem>>, %arg5: memref<8x1xf32, #tpu.memory_space<vmem>>, %arg6: memref<8x64xf32, #tpu.memory_space<vmem>>) attributes {dimension_semantics = [], scalar_prefetch = 0 : i64, scratch_operands = 0 : i64, tpu.core_type = #tpu.core_type<tc>} {
    %c0 = arith.constant 0 : index
    %c0_0 = arith.constant 0 : index
    %c0_1 = arith.constant 0 : index
    %0 = vector.load %arg0[%c0, %c0_0, %c0_1] : memref<3x16x64xf32, #tpu.memory_space<vmem>>, vector<3x16x64xf32>
    %c0_2 = arith.constant 0 : index
    %c0_3 = arith.constant 0 : index
    %c0_4 = arith.constant 0 : index
    %1 = vector.load %arg2[%c0_2, %c0_3, %c0_4] : memref<3x15x1xf32, #tpu.memory_space<vmem>>, vector<3x15x1xf32>
    %2 = vector.extract_strided_slice %0 {offsets = [0, 0, 0], sizes = [1, 16, 64], strides = [1, 1, 1]} : vector<3x16x64xf32> to vector<1x16x64xf32>
    %3 = vector.shape_cast %2 : vector<1x16x64xf32> to vector<16x64xf32>
    %4 = vector.shape_cast %3 : vector<16x64xf32> to vector<16x1x64xf32>
    %5 = vector.extract_strided_slice %1 {offsets = [0, 0, 0], sizes = [1, 15, 1], strides = [1, 1, 1]} : vector<3x15x1xf32> to vector<1x15x1xf32>
    %6 = vector.shape_cast %5 : vector<1x15x1xf32> to vector<15x1xf32>
    %7 = vector.shape_cast %6 : vector<15x1xf32> to vector<1x15x1xf32>
    %8 = vector.broadcast %4 : vector<16x1x64xf32> to vector<16x15x64xf32>
    %9 = vector.broadcast %7 : vector<1x15x1xf32> to vector<16x15x64xf32>
    %10 = arith.subf %8, %9 : vector<16x15x64xf32>
    %11 = vector.extract_strided_slice %0 {offsets = [1, 0, 0], sizes = [1, 16, 64], strides = [1, 1, 1]} : vector<3x16x64xf32> to vector<1x16x64xf32>
    %12 = vector.shape_cast %11 : vector<1x16x64xf32> to vector<16x64xf32>
    %13 = vector.shape_cast %12 : vector<16x64xf32> to vector<16x1x64xf32>
    %14 = vector.extract_strided_slice %1 {offsets = [1, 0, 0], sizes = [1, 15, 1], strides = [1, 1, 1]} : vector<3x15x1xf32> to vector<1x15x1xf32>
    %15 = vector.shape_cast %14 : vector<1x15x1xf32> to vector<15x1xf32>
    %16 = vector.shape_cast %15 : vector<15x1xf32> to vector<1x15x1xf32>
    %17 = vector.broadcast %13 : vector<16x1x64xf32> to vector<16x15x64xf32>
    %18 = vector.broadcast %16 : vector<1x15x1xf32> to vector<16x15x64xf32>
    %19 = arith.subf %17, %18 : vector<16x15x64xf32>
    %20 = vector.extract_strided_slice %0 {offsets = [2, 0, 0], sizes = [1, 16, 64], strides = [1, 1, 1]} : vector<3x16x64xf32> to vector<1x16x64xf32>
    %21 = vector.shape_cast %20 : vector<1x16x64xf32> to vector<16x64xf32>
    %22 = vector.shape_cast %21 : vector<16x64xf32> to vector<16x1x64xf32>
    %23 = vector.extract_strided_slice %1 {offsets = [2, 0, 0], sizes = [1, 15, 1], strides = [1, 1, 1]} : vector<3x15x1xf32> to vector<1x15x1xf32>
    %24 = vector.shape_cast %23 : vector<1x15x1xf32> to vector<15x1xf32>
    %25 = vector.shape_cast %24 : vector<15x1xf32> to vector<1x15x1xf32>
    %26 = vector.broadcast %22 : vector<16x1x64xf32> to vector<16x15x64xf32>
    %27 = vector.broadcast %25 : vector<1x15x1xf32> to vector<16x15x64xf32>
    %28 = arith.subf %26, %27 : vector<16x15x64xf32>
    %29 = arith.mulf %10, %10 : vector<16x15x64xf32>
    %30 = arith.mulf %19, %19 : vector<16x15x64xf32>
    %31 = arith.addf %29, %30 : vector<16x15x64xf32>
    %32 = arith.mulf %28, %28 : vector<16x15x64xf32>
    %33 = arith.addf %31, %32 : vector<16x15x64xf32>
    %34 = math.sqrt %33 : vector<16x15x64xf32>
    %cst = arith.constant 2.500000e+00 : f32
    %35 = vector.broadcast %cst : f32 to vector<16x15x64xf32>
    %36 = arith.mulf %34, %35 : vector<16x15x64xf32>
    %cst_5 = arith.constant 1.000000e+00 : f32
    %37 = vector.broadcast %cst_5 : f32 to vector<16x15x64xf32>
    %38 = arith.subf %37, %36 : vector<16x15x64xf32>
    %cst_6 = arith.constant 0.000000e+00 : f32
    %39 = vector.broadcast %cst_6 : f32 to vector<16x15x64xf32>
    %40 = arith.maximumf %38, %39 : vector<16x15x64xf32>
    %cst_7 = arith.constant 0.000000e+00 : f32
    %41 = vector.broadcast %cst_7 : f32 to vector<8x64xf32>
    %c0_8 = arith.constant 0 : index
    %c0_9 = arith.constant 0 : index
    %c0_10 = arith.constant 0 : index
    %42 = vector.load %arg1[%c0_8, %c0_9, %c0_10] : memref<4x16x64xf32, #tpu.memory_space<vmem>>, vector<1x16x64xf32>
    %43 = vector.shape_cast %42 : vector<1x16x64xf32> to vector<16x64xf32>
    %44 = vector.shape_cast %43 : vector<16x64xf32> to vector<16x1x64xf32>
    %45 = vector.broadcast %44 : vector<16x1x64xf32> to vector<16x15x64xf32>
    %46 = arith.mulf %40, %45 : vector<16x15x64xf32>
    %cst_11 = arith.constant dense<0.000000e+00> : vector<15x64xf32>
    %47 = vector.multi_reduction <add>, %46, %cst_11 [0] : vector<16x15x64xf32> to vector<15x64xf32>
    %c0_12 = arith.constant 0 : index
    %c0_13 = arith.constant 0 : index
    %c0_14 = arith.constant 0 : index
    %48 = vector.load %arg3[%c0_12, %c0_13, %c0_14] : memref<4x8x15xf32, #tpu.memory_space<vmem>>, vector<1x8x15xf32>
    %49 = vector.shape_cast %48 : vector<1x8x15xf32> to vector<8x15xf32>
    %cst_15 = arith.constant dense<0.000000e+00> : vector<8x64xf32>
    %50 = tpu.matmul %49, %47, %cst_15 {dimension_numbers = #tpu.dot_dimension_numbers<[1], [0], [0], [1], [0, 0, 1, 1], [], []>} : vector<8x15xf32>, vector<15x64xf32>, vector<8x64xf32> -> vector<8x64xf32>
    %51 = arith.addf %41, %50 : vector<8x64xf32>
    %c1 = arith.constant 1 : index
    %c0_16 = arith.constant 0 : index
    %c0_17 = arith.constant 0 : index
    %52 = vector.load %arg1[%c1, %c0_16, %c0_17] : memref<4x16x64xf32, #tpu.memory_space<vmem>>, vector<1x16x64xf32>
    %53 = vector.shape_cast %52 : vector<1x16x64xf32> to vector<16x64xf32>
    %54 = vector.shape_cast %53 : vector<16x64xf32> to vector<16x1x64xf32>
    %55 = vector.broadcast %54 : vector<16x1x64xf32> to vector<16x15x64xf32>
    %56 = arith.mulf %40, %55 : vector<16x15x64xf32>
    %cst_18 = arith.constant dense<0.000000e+00> : vector<15x64xf32>
    %57 = vector.multi_reduction <add>, %56, %cst_18 [0] : vector<16x15x64xf32> to vector<15x64xf32>
    %c1_19 = arith.constant 1 : index
    %c0_20 = arith.constant 0 : index
    %c0_21 = arith.constant 0 : index
    %58 = vector.load %arg3[%c1_19, %c0_20, %c0_21] : memref<4x8x15xf32, #tpu.memory_space<vmem>>, vector<1x8x15xf32>
    %59 = vector.shape_cast %58 : vector<1x8x15xf32> to vector<8x15xf32>
    %cst_22 = arith.constant dense<0.000000e+00> : vector<8x64xf32>
    %60 = tpu.matmul %59, %57, %cst_22 {dimension_numbers = #tpu.dot_dimension_numbers<[1], [0], [0], [1], [0, 0, 1, 1], [], []>} : vector<8x15xf32>, vector<15x64xf32>, vector<8x64xf32> -> vector<8x64xf32>
    %61 = arith.addf %51, %60 : vector<8x64xf32>
    %c2 = arith.constant 2 : index
    %c0_23 = arith.constant 0 : index
    %c0_24 = arith.constant 0 : index
    %62 = vector.load %arg1[%c2, %c0_23, %c0_24] : memref<4x16x64xf32, #tpu.memory_space<vmem>>, vector<1x16x64xf32>
    %63 = vector.shape_cast %62 : vector<1x16x64xf32> to vector<16x64xf32>
    %64 = vector.shape_cast %63 : vector<16x64xf32> to vector<16x1x64xf32>
    %65 = vector.broadcast %64 : vector<16x1x64xf32> to vector<16x15x64xf32>
    %66 = arith.mulf %40, %65 : vector<16x15x64xf32>
    %cst_25 = arith.constant dense<0.000000e+00> : vector<15x64xf32>
    %67 = vector.multi_reduction <add>, %66, %cst_25 [0] : vector<16x15x64xf32> to vector<15x64xf32>
    %c2_26 = arith.constant 2 : index
    %c0_27 = arith.constant 0 : index
    %c0_28 = arith.constant 0 : index
    %68 = vector.load %arg3[%c2_26, %c0_27, %c0_28] : memref<4x8x15xf32, #tpu.memory_space<vmem>>, vector<1x8x15xf32>
    %69 = vector.shape_cast %68 : vector<1x8x15xf32> to vector<8x15xf32>
    %cst_29 = arith.constant dense<0.000000e+00> : vector<8x64xf32>
    %70 = tpu.matmul %69, %67, %cst_29 {dimension_numbers = #tpu.dot_dimension_numbers<[1], [0], [0], [1], [0, 0, 1, 1], [], []>} : vector<8x15xf32>, vector<15x64xf32>, vector<8x64xf32> -> vector<8x64xf32>
    %71 = arith.addf %61, %70 : vector<8x64xf32>
    %c3 = arith.constant 3 : index
    %c0_30 = arith.constant 0 : index
    %c0_31 = arith.constant 0 : index
    %72 = vector.load %arg1[%c3, %c0_30, %c0_31] : memref<4x16x64xf32, #tpu.memory_space<vmem>>, vector<1x16x64xf32>
    %73 = vector.shape_cast %72 : vector<1x16x64xf32> to vector<16x64xf32>
    %74 = vector.shape_cast %73 : vector<16x64xf32> to vector<16x1x64xf32>
    %75 = vector.broadcast %74 : vector<16x1x64xf32> to vector<16x15x64xf32>
    %76 = arith.mulf %40, %75 : vector<16x15x64xf32>
    %cst_32 = arith.constant dense<0.000000e+00> : vector<15x64xf32>
    %77 = vector.multi_reduction <add>, %76, %cst_32 [0] : vector<16x15x64xf32> to vector<15x64xf32>
    %c3_33 = arith.constant 3 : index
    %c0_34 = arith.constant 0 : index
    %c0_35 = arith.constant 0 : index
    %78 = vector.load %arg3[%c3_33, %c0_34, %c0_35] : memref<4x8x15xf32, #tpu.memory_space<vmem>>, vector<1x8x15xf32>
    %79 = vector.shape_cast %78 : vector<1x8x15xf32> to vector<8x15xf32>
    %cst_36 = arith.constant dense<0.000000e+00> : vector<8x64xf32>
    %80 = tpu.matmul %79, %77, %cst_36 {dimension_numbers = #tpu.dot_dimension_numbers<[1], [0], [0], [1], [0, 0, 1, 1], [], []>} : vector<8x15xf32>, vector<15x64xf32>, vector<8x64xf32> -> vector<8x64xf32>
    %81 = arith.addf %71, %80 : vector<8x64xf32>
    %cst_37 = arith.constant dense<0.000000e+00> : vector<8xf32>
    %82 = vector.multi_reduction <add>, %81, %cst_37 [1] : vector<8x64xf32> to vector<8xf32>
    %83 = vector.shape_cast %82 : vector<8xf32> to vector<8x1xf32>
    %cst_38 = arith.constant 6.400000e+01 : f32
    %84 = vector.broadcast %cst_38 : f32 to vector<8x1xf32>
    %85 = arith.divf %83, %84 : vector<8x1xf32>
    %86 = vector.broadcast %85 : vector<8x1xf32> to vector<8x64xf32>
    %87 = arith.subf %81, %86 : vector<8x64xf32>
    %88 = arith.mulf %87, %87 : vector<8x64xf32>
    %cst_39 = arith.constant dense<0.000000e+00> : vector<8xf32>
    %89 = vector.multi_reduction <add>, %88, %cst_39 [1] : vector<8x64xf32> to vector<8xf32>
    %90 = vector.shape_cast %89 : vector<8xf32> to vector<8x1xf32>
    %cst_40 = arith.constant 6.400000e+01 : f32
    %91 = vector.broadcast %cst_40 : f32 to vector<8x1xf32>
    %92 = arith.divf %90, %91 : vector<8x1xf32>
    %93 = vector.broadcast %85 : vector<8x1xf32> to vector<8x64xf32>
    %94 = arith.subf %81, %93 : vector<8x64xf32>
    %cst_41 = arith.constant 9.99999974E-6 : f32
    %95 = vector.broadcast %cst_41 : f32 to vector<8x1xf32>
    %96 = arith.addf %92, %95 : vector<8x1xf32>
    %97 = math.rsqrt %96 : vector<8x1xf32>
    %98 = vector.broadcast %97 : vector<8x1xf32> to vector<8x64xf32>
    %99 = arith.mulf %94, %98 : vector<8x64xf32>
    %c0_42 = arith.constant 0 : index
    %c0_43 = arith.constant 0 : index
    %100 = vector.load %arg4[%c0_42, %c0_43] : memref<8x1xf32, #tpu.memory_space<vmem>>, vector<8x1xf32>
    %101 = vector.broadcast %100 : vector<8x1xf32> to vector<8x64xf32>
    %102 = arith.mulf %99, %101 : vector<8x64xf32>
    %c0_44 = arith.constant 0 : index
    %c0_45 = arith.constant 0 : index
    %103 = vector.load %arg5[%c0_44, %c0_45] : memref<8x1xf32, #tpu.memory_space<vmem>>, vector<8x1xf32>
    %104 = vector.broadcast %103 : vector<8x1xf32> to vector<8x64xf32>
    %105 = arith.addf %102, %104 : vector<8x64xf32>
    %cst_46 = arith.constant 0.000000e+00 : f32
    %106 = vector.broadcast %cst_46 : f32 to vector<8x64xf32>
    %107 = arith.cmpf ogt, %105, %106 : vector<8x64xf32>
    %cst_47 = arith.constant 2.000000e-01 : f32
    %108 = vector.broadcast %cst_47 : f32 to vector<8x64xf32>
    %109 = arith.mulf %108, %105 : vector<8x64xf32>
    %110 = arith.select %107, %105, %109 : vector<8x64xi1>, vector<8x64xf32>
    %c0_48 = arith.constant 0 : index
    %c0_49 = arith.constant 0 : index
    %111 = vector.load %arg6[%c0_48, %c0_49] : memref<8x64xf32, #tpu.memory_space<vmem>>, vector<8x64xf32>
    tpu.vector_store %arg6[%c0_48, %c0_49], %110 {strides = array<i32>} : memref<8x64xf32, #tpu.memory_space<vmem>>, vector<8x64xf32>,
    return
  }
}

</mosaic_0001>

<bundles_post_ra>
// kernel: tpu_custom_call.1
= control target key start
LH: loop header
LB: loop body
LE: loop exit
PB: predicated region body
PF: predicated region fallthrough
CT: control target
= control target key end

     0   :  { %11 = vsyncpa [#allocation3], 0  ;;  %s4965_s0 = inlined_call_operand.hbm [shape: f32[3,16,64], index: 0, kind: input, shape index: {}]   ;;  %s4966_s1 = inlined_call_operand.vmem [shape: f32[4,16,64], index: 1, kind: input, shape index: {}]   ;;  %s4967_s2 = inlined_call_operand.vmem [shape: f32[3,15,1], index: 2, kind: input, shape index: {}]   ;;  %s4968_s3 = inlined_call_operand.hbm [shape: f32[4,8,15], index: 3, kind: input, shape index: {}]   ;;  %s4969_s4 = inlined_call_operand.vmem [shape: f32[8,1], index: 4, kind: input, shape index: {}]   ;;  %s4970_s5 = inlined_call_operand.vmem [shape: f32[8,1], index: 5, kind: input, shape index: {}]   ;;  %s4971_s6 = inlined_call_operand.hbm [shape: f32[8,64], index: 6, kind: output, shape index: {}]  }
   0x1   :  { %12 = vsyncpa [#allocation6], 0 }
   0x2   :  { %13 = vsyncpa [#allocation4], 0  ;;  %s2922_s21 = smov [#allocation2]   ;;  %s2850_s25 = scalar_lea.hbm %s4965_s0, 768 }
   0x3   :  { %s19_s22 = sshll.u32 %s2922_s21, 4  ;;  %p2851_p0 = scmp.ne.s32.totalorder %s4965_s0, %s2850_s25  ;;  %s20_s22 = int_to_ptr.vmem [resolvable:$true] %s19_s22 }
   0x4   :  { %p2854_p1 = scmp.lt.u32.totalorder %s2850_s25, %s4965_s0 }
   0x6   :  { %p2856_p2 = pnand %p2854_p1, %p2851_p0 }
   0x8   :  { %2859 = shalt.err (!%p2856_p2)
}
   0x9   :  { %s2860_s30 = scalar_lea.vmem %s20_s22, 768  ;;  %p2865_p4 = scmp.lt.s32.totalorder %s20_s22, %s20_s22 }
   0xa   :  { %p2861_p3 = scmp.ne.s32.totalorder %s20_s22, %s2860_s30  ;;  %p2866_p5 = scmp.lt.s32.totalorder %s2860_s30, %s2860_s30 }
   0xc   :  { %p2867_p6 = por %p2866_p5, %p2865_p4 }
   0xe   :  { %p2868_p7 = pnand %p2867_p6, %p2861_p3 }
  0x10   :  { %2871 = shalt.err (!%p2868_p7)
}
  0x11   :  { %s2923_s7 = smov 128   ;;  %s2924_s8 = smov 8  }
  0x12   :  { %25 = dma.hbm_to_vmem [thread:$0]  %s4965_s0, 768, %s20_s22, [#allocation3], %s2923_s7, %s2923_s7, %s2924_s8  }
  0x13   :  { %s2925_s11 = smov [#allocation5]   ;;  %s2872_s15 = scalar_lea.hbm %s4968_s3, 512 }
  0x14   :  { %s35_s12 = sshll.u32 %s2925_s11, 4  ;;  %p2873_p8 = scmp.ne.s32.totalorder %s4968_s3, %s2872_s15  ;;  %s36_s12 = int_to_ptr.vmem [resolvable:$true] %s35_s12 }
  0x15   :  { %p2876_p9 = scmp.lt.u32.totalorder %s2872_s15, %s4968_s3 }
  0x17   :  { %p2878_p10 = pnand %p2876_p9, %p2873_p8 }
  0x19   :  { %2881 = shalt.err (!%p2878_p10)
}
  0x1a   :  { %s2882_s20 = scalar_lea.vmem %s36_s12, 512  ;;  %p2887_p12 = scmp.lt.s32.totalorder %s36_s12, %s36_s12 }
  0x1b   :  { %p2883_p11 = scmp.ne.s32.totalorder %s36_s12, %s2882_s20  ;;  %p2888_p13 = scmp.lt.s32.totalorder %s2882_s20, %s2882_s20 }
  0x1d   :  { %p2889_p0 = por %p2888_p13, %p2887_p12 }
  0x1f   :  { %p2890_p1 = pnand %p2889_p0, %p2883_p11 }
  0x21   :  { %2893 = shalt.err (!%p2890_p1)
}
  0x22   :  { %41 = dma.hbm_to_vmem [thread:$0]  %s4968_s3, 512, %s36_s12, [#allocation6], %s2923_s7, %s2923_s7, %s2924_s8  }
  0x23   :  { %2916 = dma.done.wait [#allocation3], 768  }
  0x24   :  { %2917 = vsyncadd [#allocation3], 4294966528 }
  0x25   :  { %2918 = dma.done.wait [#allocation6], 512  }
  0x26   :  { %2919 = vsyncadd [#allocation6], 4294966784  ;;  %v2926_v0 = vmov 0   ;;  %v60_v1 = vld [vmem:[%s4967_s2 + $0x10] sm:$0xff]  ;;  %v58_v2 = vld [vmem:[%s4967_s2] sm:$0xff]  ;;  %v4972_v7 = vmov 0.0|0.0   ;;  %v70_v10 = vlaneseq }
  0x27   :  { %2769 = vset.pattern.permute.xlu1 %v2926_v0  ;;  %2768 = vset.pattern.permute.xlu0 %v2926_v0  ;;  %v61_v3 = vld [vmem:[%s4967_s2 + $0x18] sm:$0x7f]  ;;  %v59_v4 = vld [vmem:[%s4967_s2 + $0x8] sm:$0x7f]  ;;  %v62_v6 = vld [vmem:[%s4967_s2 + $0x20] sm:$0xff] }
  0x28   :  { %468 = vperm.xlu1 %2769, %v60_v1   ;;  %246 = vperm.xlu0 %2768, %v58_v2   ;;  %v63_v5 = vld [vmem:[%s4967_s2 + $0x28] sm:$0x7f]  ;;  %v2928_v8 = vmov 1966171168   ;;  %v71_v12 = vshrl.u32 %v70_v10, 7  ;;  %v52_v13 = vld [vmem:[#allocation2] sm:$0xff] }
  0x29   :  { %2736 = vmatprep.subr.bf16.mxu1 %v4972_v7  ;;  %2744 = vmatprep.subr.bf16.mxu0 %v4972_v7  ;;  %v68_v9 = vunpack.c.l.s4 %v2928_v8  ;;  %v53_v14 = vld [vmem:[#allocation2 + $0x8] sm:$0xff]  ;;  %v66_v16 = vcombine.high %v52_v13, %v52_v13  ;;  %v54_v24 = vld [vmem:[#allocation2 + $0x10] sm:$0xff]  ;;  %v55_v28 = vld [vmem:[#allocation2 + $0x18] sm:$0xff] }
  0x2a   :  { %v115_v17 = vcombine.high %v53_v14, %v53_v14  ;;  %v288_v33 = vcombine.high %v54_v24, %v54_v24  ;;  %v3025_v36 = vsub.s32 0, %v71_v12  ;;  %v337_v40 = vcombine.high %v55_v28, %v55_v28  ;;  %v56_v43 = vld [vmem:[#allocation2 + $0x20] sm:$0xff]  ;;  %v57_v52 = vld [vmem:[#allocation2 + $0x28] sm:$0xff] }
  0x2b   :  { %v69_v11 = vunpack.c.0.s8 %v68_v9  ;;  %v510_v60 = vcombine.high %v56_v43, %v56_v43 }
  0x2c   :  { %473 = vperm.xlu1 %2769, %v61_v3   ;;  %251 = vperm.xlu0 %2768, %v59_v4   ;;  %4989 = vst [vmem:[#allocation12_spill] sm:$0xff] %v3025_v36  ;;  %v559_v4 = vcombine.high %v57_v52, %v57_v52 }
  0x2d   :  { %v3012_v15 = vsub.s32 %v69_v11, %v71_v12 }
  0x2f   :  { %4988 = vst [vmem:[#allocation11_spill] sm:$0xff] %v3012_v15  ;;  %v73_v18 = vrot.slane %v52_v13, %v3012_v15  ;;  %v80_v19 = vrot.slane %v66_v16, %v3012_v15  ;;  %v122_v20 = vrot.slane %v53_v14, %v3012_v15  ;;  %v129_v21 = vrot.slane %v115_v17, %v3012_v15 }
  0x30   :  { %695 = vperm.xlu1 %2769, %v63_v5   ;;  %690 = vperm.xlu0 %2768, %v62_v6   ;;  %v295_v39 = vrot.slane %v54_v24, %v3012_v15  ;;  %v344_v42 = vrot.slane %v55_v28, %v3012_v15  ;;  %v302_v47 = vrot.slane %v288_v33, %v3012_v15 }
  0x31   :  { %v81_v22 = vcombine.high %v73_v18, %v73_v18  ;;  %v82_v23 = vcombine.high %v80_v19, %v80_v19  ;;  %v130_v25 = vcombine.high %v122_v20, %v122_v20  ;;  %v89_v26 = vrot.slane %v73_v18, %v3012_v15 }
  0x32   :  { %v131_v27 = vcombine.high %v129_v21, %v129_v21  ;;  %v96_v30 = vrot.slane %v80_v19, %v3012_v15  ;;  %v138_v32 = vrot.slane %v122_v20, %v3012_v15  ;;  %v145_v34 = vrot.slane %v129_v21, %v3012_v15 }
  0x33   :  { %v103_v29 = vrot.slane %v81_v22, %v3012_v15  ;;  %v110_v31 = vrot.slane %v82_v23, %v3012_v15  ;;  %v152_v35 = vrot.slane %v130_v25, %v3012_v15  ;;  %v111_v37 = vcombine.high %v89_v26, %v89_v26 }
  0x34   :  { %v159_v38 = vrot.slane %v131_v27, %v3012_v15  ;;  %v112_v44 = vcombine.high %v96_v30, %v96_v30  ;;  %v160_v46 = vcombine.high %v138_v32, %v138_v32  ;;  %v161_v48 = vcombine.high %v145_v34, %v145_v34 }
  0x35   :  { %v113_v41 = vcombine.high %v103_v29, %v103_v29  ;;  %v114_v45 = vcombine.high %v110_v31, %v110_v31  ;;  %v162_v49 = vcombine.high %v152_v35, %v152_v35  ;;  %v3032_v50 = vrot.slane %v89_v26, %v3025_v36 }
  0x36   :  { %v3035_v51 = vrot.slane %v103_v29, %v3025_v36  ;;  %v163_v53 = vcombine.high %v159_v38, %v159_v38  ;;  %v3038_v54 = vrot.slane %v111_v37, %v3025_v36  ;;  %v303_v55 = vcombine.high %v295_v39, %v295_v39 }
  0x37   :  { %v351_v56 = vrot.slane %v337_v40, %v3012_v15  ;;  %v3042_v57 = vrot.slane %v113_v41, %v3025_v36  ;;  %v3045_v58 = vrot.slane %v96_v30, %v3025_v36  ;;  %v3048_v59 = vrot.slane %v110_v31, %v3025_v36 }
  0x38   :  { %v3051_v61 = vrot.slane %v112_v44, %v3025_v36  ;;  %v3054_v62 = vrot.slane %v114_v45, %v3025_v36  ;;  %v3057_v63 = vrot.slane %v138_v32, %v3025_v36  ;;  %v304_v0 = vcombine.high %v302_v47, %v302_v47 }
  0x39   :  { %v3060_v1 = vrot.slane %v152_v35, %v3025_v36  ;;  %v311_v2 = vrot.slane %v295_v39, %v3012_v15  ;;  %v352_v3 = vcombine.high %v344_v42, %v344_v42  ;;  %v3064_v5 = vrot.slane %v160_v46, %v3025_v36 }
  0x3a   :  { %v325_v6 = vrot.slane %v303_v55, %v3012_v15  ;;  %v353_v8 = vcombine.high %v351_v56, %v351_v56  ;;  %v517_v9 = vrot.slane %v56_v43, %v3012_v15  ;;  %v3069_v10 = vrot.slane %v162_v49, %v3025_v36 }
  0x3b   :  { %v318_v11 = vrot.slane %v302_v47, %v3012_v15  ;;  %v360_v12 = vrot.slane %v344_v42, %v3012_v15  ;;  %v524_v13 = vrot.slane %v510_v60, %v3012_v15  ;;  %v3075_v14 = vrot.slane %v145_v34, %v3025_v36 }
  0x3c   :  { %v3078_v16 = vrot.slane %v159_v38, %v3025_v36  ;;  %v332_v17 = vrot.slane %v304_v0, %v3012_v15  ;;  %v566_v18 = vrot.slane %v57_v52, %v3012_v15  ;;  %v333_v19 = vcombine.high %v311_v2, %v311_v2 }
  0x3d   :  { %v367_v20 = vrot.slane %v351_v56, %v3012_v15  ;;  %v374_v21 = vrot.slane %v352_v3, %v3012_v15  ;;  %v573_v22 = vrot.slane %v559_v4, %v3012_v15  ;;  %v3086_v23 = vrot.slane %v161_v48, %v3025_v36 }
  0x3e   :  { %v335_v24 = vcombine.high %v325_v6, %v325_v6  ;;  %v381_v25 = vrot.slane %v353_v8, %v3012_v15  ;;  %v525_v26 = vcombine.high %v517_v9, %v517_v9  ;;  %v3090_v27 = vrot.slane %v163_v53, %v3025_v36 }
  0x3f   :  { %v334_v28 = vcombine.high %v318_v11, %v318_v11  ;;  %v382_v29 = vcombine.high %v360_v12, %v360_v12  ;;  %v526_v30 = vcombine.high %v524_v13, %v524_v13  ;;  %v336_v31 = vcombine.high %v332_v17, %v332_v17 }
  0x40   :  { %v3093_v32 = vrot.slane %v311_v2, %v3025_v36  ;;  %v3096_v33 = vrot.slane %v325_v6, %v3025_v36  ;;  %v574_v34 = vcombine.high %v566_v18, %v566_v18  ;;  %v383_v35 = vcombine.high %v367_v20, %v367_v20 }
  0x41   :  { %v384_v37 = vcombine.high %v374_v21, %v374_v21  ;;  %v3099_v38 = vrot.slane %v333_v19, %v3025_v36  ;;  %v575_v39 = vcombine.high %v573_v22, %v573_v22  ;;  %v385_v40 = vcombine.high %v381_v25, %v381_v25 }
  0x42   :  { %v3102_v41 = vrot.slane %v335_v24, %v3025_v36  ;;  %v533_v42 = vrot.slane %v517_v9, %v3012_v15  ;;  %v547_v43 = vrot.slane %v525_v26, %v3012_v15  ;;  %v3107_v44 = vrot.slane %v318_v11, %v3025_v36 }
  0x43   :  { %v3110_v45 = vrot.slane %v332_v17, %v3025_v36  ;;  %v540_v46 = vrot.slane %v524_v13, %v3012_v15  ;;  %v554_v47 = vrot.slane %v526_v30, %v3012_v15  ;;  %v3115_v48 = vrot.slane %v334_v28, %v3025_v36 }
  0x44   :  { %v3118_v49 = vrot.slane %v336_v31, %v3025_v36  ;;  %v582_v52 = vrot.slane %v566_v18, %v3012_v15  ;;  %v596_v53 = vrot.slane %v574_v34, %v3012_v15  ;;  %v3123_v55 = vrot.slane %v360_v12, %v3025_v36 }
  0x45   :  { %v3126_v56 = vrot.slane %v374_v21, %v3025_v36  ;;  %v589_v60 = vrot.slane %v573_v22, %v3012_v15  ;;  %v603_v0 = vrot.slane %v575_v39, %v3012_v15  ;;  %v3131_v2 = vrot.slane %v382_v29, %v3025_v36 }
  0x46   :  { %v3134_v3 = vrot.slane %v384_v37, %v3025_v36  ;;  %v555_v4 = vcombine.high %v533_v42, %v533_v42  ;;  %v557_v6 = vcombine.high %v547_v43, %v547_v43  ;;  %v3137_v8 = vrot.slane %v367_v20, %v3025_v36 }
  0x47   :  { %v3140_v9 = vrot.slane %v381_v25, %v3025_v36  ;;  %v556_v11 = vcombine.high %v540_v46, %v540_v46  ;;  %v558_v12 = vcombine.high %v554_v47, %v554_v47  ;;  %v3143_v17 = vrot.slane %v383_v35, %v3025_v36 }
  0x48   :  { %v3146_v18 = vrot.slane %v385_v40, %v3025_v36  ;;  %v604_v19 = vcombine.high %v582_v52, %v582_v52  ;;  %v606_v21 = vcombine.high %v596_v53, %v596_v53  ;;  %v605_v22 = vcombine.high %v589_v60, %v589_v60 }
  0x49   :  { %v607_v24 = vcombine.high %v603_v0, %v603_v0  ;;  %v3149_v26 = vrot.slane %v533_v42, %v3025_v36  ;;  %v3152_v20 = vrot.slane %v547_v43, %v3025_v36  ;;  %v3155_v25 = vrot.slane %v555_v4, %v3025_v36 }
  0x4a   :  { %v3158_v28 = vrot.slane %v557_v6, %v3025_v36  ;;  %v3161_v29 = vrot.slane %v540_v46, %v3025_v36  ;;  %v3164_v30 = vrot.slane %v554_v47, %v3025_v36  ;;  %v3167_v31 = vrot.slane %v556_v11, %v3025_v36 }
  0x4b   :  { %v3170_v34 = vrot.slane %v558_v12, %v3025_v36  ;;  %v3173_v35 = vrot.slane %v582_v52, %v3025_v36  ;;  %v3176_v37 = vrot.slane %v596_v53, %v3025_v36  ;;  %v3181_v40 = vrot.slane %v604_v19, %v3025_v36 }
  0x4c   :  { %v3184_v42 = vrot.slane %v606_v21, %v3025_v36  ;;  %v3187_v43 = vrot.slane %v589_v60, %v3025_v36  ;;  %v3190_v46 = vrot.slane %v603_v0, %v3025_v36  ;;  %v3199_v53 = vrot.slane %v605_v22, %v3025_v36 }
  0x4d   :  { %v3202_v4 = vrot.slane %v607_v24, %v3025_v36 }
  0xa7   :  { %v247_v13 = vpop.permute.xlu0 %246  ;;  %v3178_v39 = vpop.permute.xlu1 %468 }
  0xa8   :  { %v3193_v47 = vsub.f32 %v3032_v50, %v247_v13  ;;  %v3196_v52 = vsub.f32 %v3035_v51, %v247_v13  ;;  %v3205_v11 = vsub.f32 %v3038_v54, %v247_v13  ;;  %v3208_v60 = vsub.f32 %v3042_v57, %v247_v13 }
  0xa9   :  { %v3211_v0 = vsub.f32 %v3045_v58, %v247_v13  ;;  %v3214_v12 = vsub.f32 %v3048_v59, %v247_v13  ;;  %v3217_v19 = vsub.f32 %v3051_v61, %v247_v13  ;;  %v3220_v21 = vsub.f32 %v3054_v62, %v247_v13 }
  0xaa   :  { %v3223_v22 = vsub.f32 %v3057_v63, %v247_v13  ;;  %v3226_v24 = vsub.f32 %v3060_v1, %v247_v13  ;;  %v3229_v7 = vsub.f32 %v3064_v5, %v247_v13  ;;  %v3232_v36 = vsub.f32 %v3069_v10, %v247_v13 }
  0xab   :  { %v252_v6 = vpop.permute.xlu0 %251  ;;  %4990 = vst [vmem:[#allocation13_spill] sm:$0xff] %v3214_v12  ;;  %4991 = vst [vmem:[#allocation14_spill] sm:$0xff] %v3217_v19  ;;  %v3235_v15 = vsub.f32 %v3075_v14, %v247_v13  ;;  %v3238_v19 = vsub.f32 %v3078_v16, %v247_v13  ;;  %v474_v12 = vpop.permute.xlu1 %473 }
  0xac   :  { %4992 = vst [vmem:[#allocation15_spill] sm:$0xff] %v3220_v21  ;;  %4993 = vst [vmem:[#allocation16_spill] sm:$0xff] %v3223_v22  ;;  %v3241_v21 = vsub.f32 %v3032_v50, %v252_v6  ;;  %v3244_v22 = vsub.f32 %v3035_v51, %v252_v6  ;;  %v3262_v50 = vsub.f32 %v3048_v59, %v252_v6 }
  0xad   :  { %4994 = vst [vmem:[#allocation17_spill] sm:$0xff] %v3226_v24  ;;  %4995 = vst [vmem:[#allocation18_spill] sm:$0xff] %v3229_v7  ;;  %v3247_v24 = vsub.f32 %v3086_v23, %v247_v13  ;;  %v3250_v7 = vsub.f32 %v3090_v27, %v247_v13  ;;  %v3265_v51 = vsub.f32 %v3051_v61, %v252_v6 }
  0xae   :  { %4996 = vst [vmem:[#allocation19_spill] sm:$0xff] %v3232_v36  ;;  %4997 = vst [vmem:[#allocation20_spill] sm:$0xff] %v3235_v15  ;;  %v3253_v36 = vsub.f32 %v3038_v54, %v252_v6  ;;  %v3256_v15 = vsub.f32 %v3042_v57, %v252_v6  ;;  %v3271_v13 = vsub.f32 %v3057_v63, %v252_v6 }
  0xaf   :  { %4998 = vst [vmem:[#allocation21_spill] sm:$0xff] %v3238_v19  ;;  %4999 = vst [vmem:[#allocation22_spill] sm:$0xff] %v3247_v24  ;;  %v3259_v19 = vsub.f32 %v3045_v58, %v252_v6  ;;  %v3268_v24 = vsub.f32 %v3054_v62, %v252_v6  ;;  %v3274_v54 = vsub.f32 %v3060_v1, %v252_v6 }
  0xb0   :  { %v3277_v57 = vsub.f32 %v3064_v5, %v252_v6  ;;  %v3280_v58 = vsub.f32 %v3069_v10, %v252_v6  ;;  %v3283_v59 = vsub.f32 %v3075_v14, %v252_v6  ;;  %v3286_v61 = vsub.f32 %v3078_v16, %v252_v6 }
  0xb1   :  { %v3289_v62 = vsub.f32 %v3086_v23, %v252_v6  ;;  %v3292_v63 = vsub.f32 %v3090_v27, %v252_v6  ;;  %v3296_v1 = vsub.f32 %v3093_v32, %v3178_v39  ;;  %v3299_v5 = vsub.f32 %v3093_v32, %v474_v12 }
  0xb2   :  { %v3303_v10 = vsub.f32 %v3096_v33, %v3178_v39  ;;  %v3306_v14 = vsub.f32 %v3096_v33, %v474_v12  ;;  %v3310_v16 = vsub.f32 %v3099_v38, %v3178_v39  ;;  %v3313_v23 = vsub.f32 %v3099_v38, %v474_v12 }
  0xb3   :  { %v3317_v27 = vsub.f32 %v3102_v41, %v3178_v39  ;;  %v3320_v32 = vsub.f32 %v3102_v41, %v474_v12  ;;  %v3324_v6 = vsub.f32 %v3107_v44, %v3178_v39  ;;  %v3327_v33 = vsub.f32 %v3107_v44, %v474_v12 }
  0xb4   :  { %5000 = vst [vmem:[#allocation23_spill] sm:$0xff] %v3310_v16  ;;  %v3331_v16 = vsub.f32 %v3110_v45, %v3178_v39  ;;  %v3334_v38 = vsub.f32 %v3110_v45, %v474_v12  ;;  %v3341_v41 = vsub.f32 %v3115_v48, %v474_v12  ;;  %v3348_v44 = vsub.f32 %v3118_v49, %v474_v12 }
  0xb5   :  { %5001 = vst [vmem:[#allocation24_spill] sm:$0xff] %v3317_v27  ;;  %5002 = vst [vmem:[#allocation25_spill] sm:$0xff] %v3324_v6  ;;  %v3338_v27 = vsub.f32 %v3115_v48, %v3178_v39  ;;  %v3345_v6 = vsub.f32 %v3118_v49, %v3178_v39  ;;  %v3355_v45 = vsub.f32 %v3123_v55, %v474_v12 }
  0xb6   :  { %5003 = vst [vmem:[#allocation26_spill] sm:$0xff] %v3327_v33  ;;  %5004 = vst [vmem:[#allocation27_spill] sm:$0xff] %v3331_v16  ;;  %v3352_v16 = vsub.f32 %v3123_v55, %v3178_v39  ;;  %v691_v33 = vpop.permute.xlu0 %690  ;;  %v3359_v48 = vsub.f32 %v3126_v56, %v3178_v39  ;;  %v3366_v49 = vsub.f32 %v3131_v2, %v3178_v39 }
  0xb7   :  { %5005 = vst [vmem:[#allocation28_spill] sm:$0xff] %v3334_v38  ;;  %5006 = vst [vmem:[#allocation29_spill] sm:$0xff] %v3341_v41  ;;  %v696_v38 = vpop.permute.xlu1 %695  ;;  %v3362_v41 = vsub.f32 %v3126_v56, %v474_v12  ;;  %v3373_v55 = vsub.f32 %v3134_v3, %v3178_v39  ;;  %v3383_v56 = vsub.f32 %v3137_v8, %v474_v12 }
  0xb8   :  { %5007 = vst [vmem:[#allocation30_spill] sm:$0xff] %v3348_v44  ;;  %5008 = vst [vmem:[#allocation31_spill] sm:$0xff] %v3355_v45  ;;  %v3369_v44 = vsub.f32 %v3131_v2, %v474_v12  ;;  %v3376_v45 = vsub.f32 %v3134_v3, %v474_v12  ;;  %v3390_v2 = vsub.f32 %v3140_v9, %v474_v12 }
  0xb9   :  { %5009 = vst [vmem:[#allocation32_spill] sm:$0xff] %v3359_v48  ;;  %5010 = vst [vmem:[#allocation33_spill] sm:$0xff] %v3366_v49  ;;  %v3380_v48 = vsub.f32 %v3137_v8, %v3178_v39  ;;  %v3387_v49 = vsub.f32 %v3140_v9, %v3178_v39  ;;  %v3397_v3 = vsub.f32 %v3143_v17, %v474_v12 }
  0xba   :  { %5011 = vst [vmem:[#allocation34_spill] sm:$0xff] %v3373_v55  ;;  %5013 = vst [vmem:[#allocation36_spill] sm:$0xff] %v3383_v56  ;;  %v3394_v55 = vsub.f32 %v3143_v17, %v3178_v39  ;;  %v3404_v8 = vsub.f32 %v3146_v18, %v474_v12  ;;  %v3407_v56 = vsub.f32 %v3149_v26, %v691_v33 }
  0xbb   :  { %5012 = vst [vmem:[#allocation35_spill] sm:$0xff] %v3380_v48  ;;  %5014 = vst [vmem:[#allocation37_spill] sm:$0xff] %v3390_v2  ;;  %v3401_v48 = vsub.f32 %v3146_v18, %v3178_v39  ;;  %v3410_v9 = vsub.f32 %v3149_v26, %v696_v38  ;;  %v3413_v2 = vsub.f32 %v3152_v20, %v691_v33 }
  0xbc   :  { %5015 = vst [vmem:[#allocation38_spill] sm:$0xff] %v3394_v55  ;;  %5016 = vst [vmem:[#allocation39_spill] sm:$0xff] %v3407_v56  ;;  %v3416_v55 = vsub.f32 %v3152_v20, %v696_v38  ;;  %v3419_v17 = vsub.f32 %v3155_v25, %v691_v33  ;;  %v3422_v39 = vsub.f32 %v3155_v25, %v696_v38 }
  0xbd   :  { %5017 = vst [vmem:[#allocation40_spill] sm:$0xff] %v3410_v9  ;;  %5018 = vst [vmem:[#allocation41_spill] sm:$0xff] %v3413_v2  ;;  %v3425_v18 = vsub.f32 %v3158_v28, %v691_v33  ;;  %v3428_v12 = vsub.f32 %v3158_v28, %v696_v38  ;;  %v3431_v26 = vsub.f32 %v3161_v29, %v691_v33 }
  0xbe   :  { %5019 = vst [vmem:[#allocation42_spill] sm:$0xff] %v3416_v55  ;;  %5020 = vst [vmem:[#allocation43_spill] sm:$0xff] %v3419_v17  ;;  %v3434_v2 = vsub.f32 %v3161_v29, %v696_v38  ;;  %v3437_v20 = vsub.f32 %v3164_v30, %v691_v33  ;;  %v3440_v17 = vsub.f32 %v3164_v30, %v696_v38  ;;  %v5073_v55 = vld [vmem:[#allocation29_spill] sm:$0xff] }
  0xbf   :  { %5021 = vst [vmem:[#allocation44_spill] sm:$0xff] %v3422_v39  ;;  %5022 = vst [vmem:[#allocation45_spill] sm:$0xff] %v3425_v18  ;;  %v3443_v25 = vsub.f32 %v3167_v31, %v691_v33  ;;  %v3446_v18 = vsub.f32 %v3167_v31, %v696_v38  ;;  %v3449_v28 = vsub.f32 %v3170_v34, %v691_v33  ;;  %v5072_v39 = vld [vmem:[#allocation28_spill] sm:$0xff]  ;;  %v5074_v9 = vld [vmem:[#allocation30_spill] sm:$0xff] }
  0xc0   :  { %5023 = vst [vmem:[#allocation46_spill] sm:$0xff] %v3428_v12  ;;  %5024 = vst [vmem:[#allocation47_spill] sm:$0xff] %v3431_v26  ;;  %v3452_v26 = vsub.f32 %v3170_v34, %v696_v38  ;;  %v3455_v29 = vsub.f32 %v3173_v35, %v691_v33  ;;  %v3461_v30 = vsub.f32 %v3176_v37, %v691_v33  ;;  %v5071_v12 = vld [vmem:[#allocation27_spill] sm:$0xff] }
  0xc1   :  { %5025 = vst [vmem:[#allocation48_spill] sm:$0xff] %v3434_v2  ;;  %5026 = vst [vmem:[#allocation49_spill] sm:$0xff] %v3437_v20  ;;  %v3458_v20 = vsub.f32 %v3173_v35, %v696_v38  ;;  %v3467_v31 = vsub.f32 %v3181_v40, %v691_v33  ;;  %v3473_v34 = vsub.f32 %v3184_v42, %v691_v33  ;;  %v5070_v2 = vld [vmem:[#allocation26_spill] sm:$0xff]  ;;  %v5075_v56 = vld [vmem:[#allocation31_spill] sm:$0xff] }
  0xc2   :  { %5027 = vst [vmem:[#allocation50_spill] sm:$0xff] %v3440_v17  ;;  %5028 = vst [vmem:[#allocation51_spill] sm:$0xff] %v3443_v25  ;;  %v3464_v25 = vsub.f32 %v3176_v37, %v696_v38  ;;  %v3479_v35 = vsub.f32 %v3187_v43, %v691_v33  ;;  %v3485_v37 = vsub.f32 %v3190_v46, %v691_v33  ;;  %v5069_v17 = vld [vmem:[#allocation25_spill] sm:$0xff] }
  0xc3   :  { %5029 = vst [vmem:[#allocation52_spill] sm:$0xff] %v3446_v18  ;;  %5030 = vst [vmem:[#allocation53_spill] sm:$0xff] %v3449_v28  ;;  %v3470_v28 = vsub.f32 %v3181_v40, %v696_v38  ;;  %v3491_v40 = vsub.f32 %v3199_v53, %v691_v33 }
  0xc4   :  { %5031 = vst [vmem:[#allocation54_spill] sm:$0xff] %v3452_v26  ;;  %5032 = vst [vmem:[#allocation55_spill] sm:$0xff] %v3455_v29  ;;  %v3476_v29 = vsub.f32 %v3184_v42, %v696_v38  ;;  %v3497_v42 = vsub.f32 %v3202_v4, %v691_v33  ;;  %v5048_v33 = vld [vmem:[#allocation13_spill] sm:$0xff]  ;;  %v767_v26 = vmul.f32 %v3313_v23, %v3313_v23 }
  0xc5   :  { %5033 = vst [vmem:[#allocation56_spill] sm:$0xff] %v3458_v20  ;;  %5034 = vst [vmem:[#allocation57_spill] sm:$0xff] %v3461_v30  ;;  %v3482_v30 = vsub.f32 %v3187_v43, %v696_v38  ;;  %v3504_v43 = vmul.f32 %v3193_v47, %v3193_v47  ;;  %v3524_v47 = vmul.f32 %v3253_v36, %v3253_v36  ;;  %v5067_v20 = vld [vmem:[#allocation23_spill] sm:$0xff] }
  0xc6   :  { %5035 = vst [vmem:[#allocation58_spill] sm:$0xff] %v3464_v25  ;;  %5036 = vst [vmem:[#allocation59_spill] sm:$0xff] %v3467_v31  ;;  %v3488_v31 = vsub.f32 %v3190_v46, %v696_v38  ;;  %v3508_v46 = vmul.f32 %v3241_v21, %v3241_v21  ;;  %v3528_v21 = vmul.f32 %v3208_v60, %v3208_v60 }
  0xc7   :  { %5037 = vst [vmem:[#allocation60_spill] sm:$0xff] %v3470_v28  ;;  %5038 = vst [vmem:[#allocation61_spill] sm:$0xff] %v3473_v34  ;;  %v3494_v34 = vsub.f32 %v3199_v53, %v696_v38  ;;  %v3516_v53 = vmul.f32 %v3244_v22, %v3244_v22  ;;  %v3536_v22 = vmul.f32 %v3211_v0, %v3211_v0  ;;  %v5062_v28 = vld [vmem:[#allocation22_spill] sm:$0xff] }
  0xc8   :  { %5039 = vst [vmem:[#allocation62_spill] sm:$0xff] %v3476_v29  ;;  %5040 = vst [vmem:[#allocation63_spill] sm:$0xff] %v3479_v35  ;;  %v3500_v35 = vsub.f32 %v3202_v4, %v696_v38  ;;  %v3520_v4 = vmul.f32 %v3205_v11, %v3205_v11  ;;  %v3540_v11 = vmul.f32 %v3259_v19, %v3259_v19  ;;  %v5049_v38 = vld [vmem:[#allocation14_spill] sm:$0xff]  ;;  %v5059_v29 = vld [vmem:[#allocation21_spill] sm:$0xff] }
  0xc9   :  { %5041 = vst [vmem:[#allocation64_spill] sm:$0xff] %v3482_v30  ;;  %5042 = vst [vmem:[#allocation65_spill] sm:$0xff] %v3485_v37  ;;  %v3544_v36 = vmul.f32 %v5048_v33, %v5048_v33  ;;  %v3548_v60 = vmul.f32 %v3262_v50, %v3262_v50  ;;  %v3556_v0 = vmul.f32 %v3265_v51, %v3265_v51  ;;  %v5054_v37 = vld [vmem:[#allocation19_spill] sm:$0xff]  ;;  %v5056_v30 = vld [vmem:[#allocation20_spill] sm:$0xff] }
  0xca   :  { %5043 = vst [vmem:[#allocation66_spill] sm:$0xff] %v3488_v31  ;;  %5044 = vst [vmem:[#allocation67_spill] sm:$0xff] %v3491_v40  ;;  %v3512_v40 = vmul.f32 %v3196_v52, %v3196_v52  ;;  %v3532_v52 = vmul.f32 %v3256_v15, %v3256_v15  ;;  %v3552_v15 = vmul.f32 %v5049_v38, %v5049_v38  ;;  %v5053_v31 = vld [vmem:[#allocation18_spill] sm:$0xff] }
  0xcb   :  { %5045 = vst [vmem:[#allocation68_spill] sm:$0xff] %v3494_v34  ;;  %5046 = vst [vmem:[#allocation69_spill] sm:$0xff] %v3497_v42  ;;  %v3564_v33 = vmul.f32 %v3268_v24, %v3268_v24  ;;  %v5051_v42 = vld [vmem:[#allocation16_spill] sm:$0xff]  ;;  %v3572_v38 = vmul.f32 %v3271_v13, %v3271_v13  ;;  %v5052_v34 = vld [vmem:[#allocation17_spill] sm:$0xff]  ;;  %v3584_v24 = vmul.f32 %v5053_v31, %v5053_v31 }
  0xcc   :  { %5047 = vst [vmem:[#allocation70_spill] sm:$0xff] %v3500_v35  ;;  %v5050_v35 = vld [vmem:[#allocation15_spill] sm:$0xff]  ;;  %v3568_v50 = vmul.f32 %v5051_v42, %v5051_v42  ;;  %v3576_v51 = vmul.f32 %v5052_v34, %v5052_v34  ;;  %v3588_v42 = vmul.f32 %v3277_v57, %v3277_v57  ;;  %v3592_v13 = vmul.f32 %v5054_v37, %v5054_v37 }
  0xcd   :  { %v3560_v19 = vmul.f32 %v5050_v35, %v5050_v35  ;;  %v3580_v35 = vmul.f32 %v3274_v54, %v3274_v54  ;;  %v3596_v34 = vmul.f32 %v3280_v58, %v3280_v58  ;;  %v3600_v54 = vmul.f32 %v5056_v30, %v5056_v30 }
  0xce   :  { %v3604_v31 = vmul.f32 %v3283_v59, %v3283_v59  ;;  %v3608_v57 = vmul.f32 %v5059_v29, %v5059_v29  ;;  %v3612_v37 = vmul.f32 %v3286_v61, %v3286_v61  ;;  %v3616_v58 = vmul.f32 %v5062_v28, %v5062_v28 }
  0xcf   :  { %5055 = vst [vmem:[#allocation13_spill] sm:$0xff] %v3596_v34  ;;  %5057 = vst [vmem:[#allocation14_spill] sm:$0xff] %v3600_v54  ;;  %v3620_v30 = vmul.f32 %v3289_v62, %v3289_v62  ;;  %v3624_v59 = vmul.f32 %v3250_v7, %v3250_v7  ;;  %v3628_v29 = vmul.f32 %v3292_v63, %v3292_v63  ;;  %v5068_v63 = vld [vmem:[#allocation24_spill] sm:$0xff] }
  0xd0   :  { %5058 = vst [vmem:[#allocation15_spill] sm:$0xff] %v3604_v31  ;;  %5060 = vst [vmem:[#allocation16_spill] sm:$0xff] %v3608_v57  ;;  %v762_v61 = vmul.f32 %v3296_v1, %v3296_v1  ;;  %v763_v25 = vmul.f32 %v3299_v5, %v3299_v5  ;;  %v764_v28 = vmul.f32 %v3303_v10, %v3303_v10  ;;  %v5081_v57 = vld [vmem:[#allocation37_spill] sm:$0xff]  ;;  %v5082_v31 = vld [vmem:[#allocation38_spill] sm:$0xff] }
  0xd1   :  { %5061 = vst [vmem:[#allocation17_spill] sm:$0xff] %v3612_v37  ;;  %5063 = vst [vmem:[#allocation18_spill] sm:$0xff] %v3616_v58  ;;  %v765_v62 = vmul.f32 %v3306_v14, %v3306_v14  ;;  %v766_v7 = vmul.f32 %v5067_v20, %v5067_v20  ;;  %v768_v18 = vmul.f32 %v5068_v63, %v5068_v63  ;;  %v5079_v58 = vld [vmem:[#allocation35_spill] sm:$0xff]  ;;  %v5080_v37 = vld [vmem:[#allocation36_spill] sm:$0xff] }
  0xd2   :  { %5064 = vst [vmem:[#allocation19_spill] sm:$0xff] %v3620_v30  ;;  %5065 = vst [vmem:[#allocation20_spill] sm:$0xff] %v3624_v59  ;;  %v769_v1 = vmul.f32 %v3320_v32, %v3320_v32  ;;  %v770_v5 = vmul.f32 %v5069_v17, %v5069_v17  ;;  %v771_v10 = vmul.f32 %v5070_v2, %v5070_v2  ;;  %v5077_v59 = vld [vmem:[#allocation33_spill] sm:$0xff]  ;;  %v5078_v30 = vld [vmem:[#allocation34_spill] sm:$0xff] }
  0xd3   :  { %5066 = vst [vmem:[#allocation21_spill] sm:$0xff] %v3628_v29  ;;  %v772_v14 = vmul.f32 %v5071_v12, %v5071_v12  ;;  %v773_v20 = vmul.f32 %v5072_v39, %v5072_v39  ;;  %v774_v23 = vmul.f32 %v3338_v27, %v3338_v27  ;;  %v775_v63 = vmul.f32 %v5073_v55, %v5073_v55  ;;  %v5076_v29 = vld [vmem:[#allocation32_spill] sm:$0xff] }
  0xd4   :  { %v776_v32 = vmul.f32 %v3345_v6, %v3345_v6  ;;  %v777_v17 = vmul.f32 %v5074_v9, %v5074_v9  ;;  %v778_v2 = vmul.f32 %v3352_v16, %v3352_v16  ;;  %v779_v12 = vmul.f32 %v5075_v56, %v5075_v56 }
  0xd5   :  { %v780_v39 = vmul.f32 %v5076_v29, %v5076_v29  ;;  %v781_v27 = vmul.f32 %v3362_v41, %v3362_v41  ;;  %v782_v55 = vmul.f32 %v5077_v59, %v5077_v59  ;;  %v783_v6 = vmul.f32 %v3369_v44, %v3369_v44 }
  0xd6   :  { %v784_v9 = vmul.f32 %v5078_v30, %v5078_v30  ;;  %v785_v16 = vmul.f32 %v3376_v45, %v3376_v45  ;;  %v786_v56 = vmul.f32 %v5079_v58, %v5079_v58  ;;  %v787_v29 = vmul.f32 %v5080_v37, %v5080_v37 }
  0xd7   :  { %v788_v41 = vmul.f32 %v3387_v49, %v3387_v49  ;;  %v789_v59 = vmul.f32 %v5081_v57, %v5081_v57  ;;  %v790_v44 = vmul.f32 %v5082_v31, %v5082_v31  ;;  %v791_v30 = vmul.f32 %v3397_v3, %v3397_v3 }
  0xd8   :  { %v792_v45 = vmul.f32 %v3401_v48, %v3401_v48  ;;  %v793_v58 = vmul.f32 %v3404_v8, %v3404_v8  ;;  %v794_v37 = vadd.f32 %v762_v61, %v3504_v43  ;;  %v795_v54 = vadd.f32 %v763_v25, %v3508_v46 }
  0xd9   :  { %v796_v49 = vadd.f32 %v764_v28, %v3512_v40  ;;  %v797_v57 = vadd.f32 %v765_v62, %v3516_v53  ;;  %v798_v34 = vadd.f32 %v766_v7, %v3520_v4  ;;  %v3700_v31 = vadd.f32 %v767_v26, %v3524_v47  ;;  %v5090_v62 = vld [vmem:[#allocation20_spill] sm:$0xff] }
  0xda   :  { %v3703_v3 = vadd.f32 %v768_v18, %v3528_v21  ;;  %v3706_v48 = vadd.f32 %v769_v1, %v3532_v52  ;;  %v3709_v8 = vadd.f32 %v770_v5, %v3536_v22  ;;  %v3712_v25 = vadd.f32 %v771_v10, %v3540_v11  ;;  %v5092_v1 = vld [vmem:[#allocation21_spill] sm:$0xff]  ;;  %v5094_v10 = vld [vmem:[#allocation39_spill] sm:$0xff] }
  0xdb   :  { %v3715_v40 = vadd.f32 %v772_v14, %v3544_v36  ;;  %v3718_v43 = vadd.f32 %v773_v20, %v3548_v60  ;;  %v3721_v26 = vadd.f32 %v774_v23, %v3552_v15  ;;  %v3724_v18 = vadd.f32 %v775_v63, %v3556_v0  ;;  %v5083_v60 = vld [vmem:[#allocation13_spill] sm:$0xff]  ;;  %v5084_v0 = vld [vmem:[#allocation14_spill] sm:$0xff]  ;;  %v5095_v20 = vld [vmem:[#allocation40_spill] sm:$0xff] }
  0xdc   :  { %v3727_v46 = vadd.f32 %v776_v32, %v3560_v19  ;;  %v3730_v53 = vadd.f32 %v777_v17, %v3564_v33  ;;  %v3733_v4 = vadd.f32 %v778_v2, %v3568_v50  ;;  %v3736_v47 = vadd.f32 %v779_v12, %v3572_v38  ;;  %v5085_v33 = vld [vmem:[#allocation15_spill] sm:$0xff]  ;;  %v5086_v38 = vld [vmem:[#allocation16_spill] sm:$0xff]  ;;  %v5096_v63 = vld [vmem:[#allocation41_spill] sm:$0xff] }
  0xdd   :  { %v3739_v21 = vadd.f32 %v780_v39, %v3576_v51  ;;  %v3742_v52 = vadd.f32 %v781_v27, %v3580_v35  ;;  %v3745_v22 = vadd.f32 %v782_v55, %v3584_v24  ;;  %v3748_v11 = vadd.f32 %v783_v6, %v3588_v42  ;;  %v5087_v35 = vld [vmem:[#allocation17_spill] sm:$0xff]  ;;  %v5088_v42 = vld [vmem:[#allocation18_spill] sm:$0xff]  ;;  %v5098_v12 = vld [vmem:[#allocation43_spill] sm:$0xff] }
  0xde   :  { %v3751_v36 = vadd.f32 %v784_v9, %v3592_v13  ;;  %v3754_v15 = vadd.f32 %v785_v16, %v5083_v60  ;;  %v3757_v19 = vadd.f32 %v786_v56, %v5084_v0  ;;  %v3760_v50 = vadd.f32 %v787_v29, %v5085_v33  ;;  %v5089_v13 = vld [vmem:[#allocation19_spill] sm:$0xff]  ;;  %v5097_v17 = vld [vmem:[#allocation42_spill] sm:$0xff]  ;;  %v5099_v27 = vld [vmem:[#allocation44_spill] sm:$0xff] }
  0xdf   :  { %v3763_v51 = vadd.f32 %v788_v41, %v5086_v38  ;;  %v3766_v24 = vadd.f32 %v789_v59, %v5087_v35  ;;  %v3769_v61 = vadd.f32 %v790_v44, %v5088_v42  ;;  %v3772_v28 = vadd.f32 %v791_v30, %v5089_v13  ;;  %v5100_v6 = vld [vmem:[#allocation45_spill] sm:$0xff]  ;;  %v5101_v16 = vld [vmem:[#allocation46_spill] sm:$0xff]  ;;  %v5102_v29 = vld [vmem:[#allocation47_spill] sm:$0xff] }
  0xe0   :  { %v3775_v7 = vadd.f32 %v792_v45, %v5090_v62  ;;  %v3778_v5 = vadd.f32 %v793_v58, %v5092_v1  ;;  %v826_v14 = vmul.f32 %v5094_v10, %v5094_v10  ;;  %v827_v23 = vmul.f32 %v5095_v20, %v5095_v20  ;;  %v5103_v59 = vld [vmem:[#allocation48_spill] sm:$0xff]  ;;  %v5104_v30 = vld [vmem:[#allocation49_spill] sm:$0xff]  ;;  %v5105_v58 = vld [vmem:[#allocation50_spill] sm:$0xff] }
  0xe1   :  { %v828_v32 = vmul.f32 %v5096_v63, %v5096_v63  ;;  %v829_v2 = vmul.f32 %v5097_v17, %v5097_v17  ;;  %v830_v39 = vmul.f32 %v5098_v12, %v5098_v12  ;;  %v831_v55 = vmul.f32 %v5099_v27, %v5099_v27  ;;  %v5106_v0 = vld [vmem:[#allocation51_spill] sm:$0xff]  ;;  %v5107_v38 = vld [vmem:[#allocation52_spill] sm:$0xff]  ;;  %v5108_v42 = vld [vmem:[#allocation53_spill] sm:$0xff] }
  0xe2   :  { %5091 = vst [vmem:[#allocation22_spill] sm:$0xff] %v3775_v7  ;;  %5093 = vst [vmem:[#allocation23_spill] sm:$0xff] %v3778_v5  ;;  %v832_v9 = vmul.f32 %v5100_v6, %v5100_v6  ;;  %v833_v56 = vmul.f32 %v5101_v16, %v5101_v16  ;;  %v834_v41 = vmul.f32 %v5102_v29, %v5102_v29  ;;  %v5109_v62 = vld [vmem:[#allocation54_spill] sm:$0xff]  ;;  %v5110_v10 = vld [vmem:[#allocation55_spill] sm:$0xff] }
  0xe3   :  { %v835_v44 = vmul.f32 %v5103_v59, %v5103_v59  ;;  %v836_v45 = vmul.f32 %v5104_v30, %v5104_v30  ;;  %v837_v60 = vmul.f32 %v5105_v58, %v5105_v58  ;;  %v838_v33 = vmul.f32 %v5106_v0, %v5106_v0  ;;  %v5111_v17 = vld [vmem:[#allocation56_spill] sm:$0xff]  ;;  %v5112_v27 = vld [vmem:[#allocation57_spill] sm:$0xff]  ;;  %v5113_v16 = vld [vmem:[#allocation58_spill] sm:$0xff] }
  0xe4   :  { %v839_v35 = vmul.f32 %v5107_v38, %v5107_v38  ;;  %v840_v13 = vmul.f32 %v5108_v42, %v5108_v42  ;;  %v841_v1 = vmul.f32 %v5109_v62, %v5109_v62  ;;  %v842_v20 = vmul.f32 %v5110_v10, %v5110_v10  ;;  %v5114_v30 = vld [vmem:[#allocation59_spill] sm:$0xff]  ;;  %v5115_v0 = vld [vmem:[#allocation60_spill] sm:$0xff]  ;;  %v5116_v42 = vld [vmem:[#allocation61_spill] sm:$0xff] }
  0xe5   :  { %v3814_v63 = vadd.f32 %v826_v14, %v794_v37  ;;  %v843_v12 = vmul.f32 %v5111_v17, %v5111_v17  ;;  %v844_v6 = vmul.f32 %v5112_v27, %v5112_v27  ;;  %v845_v29 = vmul.f32 %v5113_v16, %v5113_v16  ;;  %v5117_v62 = vld [vmem:[#allocation62_spill] sm:$0xff]  ;;  %v5118_v17 = vld [vmem:[#allocation63_spill] sm:$0xff]  ;;  %v5119_v16 = vld [vmem:[#allocation64_spill] sm:$0xff] }
  0xe6   :  { %v3822_v59 = vadd.f32 %v827_v23, %v795_v54  ;;  %v846_v58 = vmul.f32 %v5114_v30, %v5114_v30  ;;  %v847_v38 = vmul.f32 %v5115_v0, %v5115_v0  ;;  %v848_v37 = vmul.f32 %v5116_v42, %v5116_v42  ;;  %v5120_v30 = vld [vmem:[#allocation65_spill] sm:$0xff]  ;;  %v5121_v0 = vld [vmem:[#allocation66_spill] sm:$0xff] }
  0xe7   :  { %v3830_v14 = vadd.f32 %v828_v32, %v796_v49  ;;  %v849_v10 = vmul.f32 %v5117_v62, %v5117_v62  ;;  %v850_v27 = vmul.f32 %v5118_v17, %v5118_v17  ;;  %v851_v54 = vmul.f32 %v5119_v16, %v5119_v16  ;;  %v5122_v49 = vld [vmem:[#allocation67_spill] sm:$0xff]  ;;  %v5123_v62 = vld [vmem:[#allocation68_spill] sm:$0xff] }
  0xe8   :  { %v3838_v23 = vadd.f32 %v829_v2, %v797_v57  ;;  %v852_v5 = vmul.f32 %v5120_v30, %v5120_v30  ;;  %v853_v7 = vmul.f32 %v5121_v0, %v5121_v0  ;;  %v3844_v42 = vadd.f32 %v830_v39, %v798_v34  ;;  %v5124_v57 = vld [vmem:[#allocation69_spill] sm:$0xff]  ;;  %v5125_v30 = vld [vmem:[#allocation70_spill] sm:$0xff] }
  0xe9   :  { %2784 = vrsqrt.f32 %v3814_v63  ;;  %v854_v32 = vmul.f32 %v5122_v49, %v5122_v49  ;;  %v855_v17 = vmul.f32 %v5123_v62, %v5123_v62  ;;  %v3852_v16 = vadd.f32 %v831_v55, %v3700_v31 }
  0xea   :  { %2786 = vrsqrt.f32 %v3822_v59  ;;  %v856_v2 = vmul.f32 %v5124_v57, %v5124_v57  ;;  %v857_v34 = vmul.f32 %v5125_v30, %v5125_v30  ;;  %v3860_v39 = vadd.f32 %v832_v9, %v3703_v3  ;;  %v5126_v9 = vld [vmem:[#allocation22_spill] sm:$0xff] }
  0xeb   :  { %2788 = vrsqrt.f32 %v3830_v14  ;;  %v3864_v0 = vadd.f32 %v833_v56, %v3706_v48  ;;  %v3867_v49 = vadd.f32 %v834_v41, %v3709_v8  ;;  %v3870_v31 = vadd.f32 %v835_v44, %v3712_v25 }
  0xec   :  { %2790 = vrsqrt.f32 %v3838_v23  ;;  %v3874_v55 = vadd.f32 %v836_v45, %v3715_v40  ;;  %v3877_v62 = vadd.f32 %v837_v60, %v3718_v43  ;;  %v3880_v3 = vadd.f32 %v838_v33, %v3721_v26 }
  0xed   :  { %2792 = vrsqrt.f32 %v3844_v42  ;;  %v3884_v48 = vadd.f32 %v839_v35, %v3724_v18  ;;  %v3887_v8 = vadd.f32 %v840_v13, %v3727_v46  ;;  %v3890_v25 = vadd.f32 %v841_v1, %v3730_v53 }
  0xee   :  { %2794 = vrsqrt.f32 %v3852_v16  ;;  %v3894_v40 = vadd.f32 %v842_v20, %v3733_v4  ;;  %v3897_v43 = vadd.f32 %v843_v12, %v3736_v47  ;;  %v3900_v26 = vadd.f32 %v844_v6, %v3739_v21 }
  0xef   :  { %2796 = vrsqrt.f32 %v3860_v39  ;;  %v3904_v18 = vadd.f32 %v845_v29, %v3742_v52  ;;  %v3907_v46 = vadd.f32 %v846_v58, %v3745_v22  ;;  %v3910_v53 = vadd.f32 %v847_v38, %v3748_v11 }
  0xf0   :  { %2798 = vrsqrt.f32 %v3864_v0  ;;  %v3914_v4 = vadd.f32 %v848_v37, %v3751_v36  ;;  %v3917_v47 = vadd.f32 %v849_v10, %v3754_v15  ;;  %v3920_v21 = vadd.f32 %v850_v27, %v3757_v19 }
  0xf1   :  { %2800 = vrsqrt.f32 %v3867_v49  ;;  %v3924_v52 = vadd.f32 %v851_v54, %v3760_v50  ;;  %v3927_v22 = vadd.f32 %v852_v5, %v3763_v51  ;;  %v3930_v11 = vadd.f32 %v853_v7, %v3766_v24  ;;  %v5127_v50 = vld [vmem:[#allocation23_spill] sm:$0xff] }
  0xf2   :  { %2802 = vrsqrt.f32 %v3870_v31  ;;  %v3934_v15 = vadd.f32 %v854_v32, %v3769_v61  ;;  %v3937_v19 = vadd.f32 %v855_v17, %v3772_v28  ;;  %v3940_v56 = vadd.f32 %v856_v2, %v5126_v9 }
  0xf3   :  { %v2785_v36 = vpop.eup %2784  ;;  %v3943_v41 = vadd.f32 %v857_v34, %v5127_v50  ;;  %vm892_vm0 = vcmp.eq.f32.partialorder %v3814_v63, inf  ;;  %v895_v24 = vand.u32 2147483648, %v3814_v63  ;;  %vm899_vm1 = vcmp.eq.f32.partialorder %v3822_v59, inf }
  0xf4   :  { %v2787_v51 = vpop.eup %2786  ;;  %2804 = vrsqrt.f32 %v3874_v55  ;;  %vm894_vm2 = vcmp.eq.f32.partialorder %v3814_v63, 0.0  ;;  %vm901_vm3 = vcmp.eq.f32.partialorder %v3822_v59, 0.0  ;;  %v902_v28 = vand.u32 2147483648, %v3822_v59 }
  0xf5   :  { %v2789_v61 = vpop.eup %2788  ;;  %vm906_vm4 = vcmp.eq.f32.partialorder %v3830_v14, inf  ;;  %v909_v7 = vand.u32 2147483648, %v3830_v14  ;;  %2806 = vrsqrt.f32 %v3877_v62  ;;  %vm913_vm5 = vcmp.eq.f32.partialorder %v3838_v23, inf }
  0xf6   :  { %v2791_v5 = vpop.eup %2790  ;;  %v916_v44 = vand.u32 2147483648, %v3838_v23  ;;  %vm920_vm6 = vcmp.eq.f32.partialorder %v3844_v42, inf  ;;  %2808 = vrsqrt.f32 %v3880_v3  ;;  %v891_v60 = vmul.f32 %v2785_v36, %v3814_v63 }
  0xf7   :  { %v2793_v45 = vpop.eup %2792  ;;  %v898_v33 = vmul.f32 %v2787_v51, %v3822_v59  ;;  %vm908_vm7 = vcmp.eq.f32.partialorder %v3830_v14, 0.0  ;;  %vm915_vm8 = vcmp.eq.f32.partialorder %v3838_v23, 0.0  ;;  %v923_v35 = vand.u32 2147483648, %v3844_v42 }
  0xf8   :  { %2810 = vrsqrt.f32 %v3884_v48  ;;  %v2795_v13 = vpop.eup %2794  ;;  %vm922_vm9 = vcmp.eq.f32.partialorder %v3844_v42, 0.0  ;;  %vm927_vm10 = vcmp.eq.f32.partialorder %v3852_v16, inf  ;;  %v930_v1 = vand.u32 2147483648, %v3852_v16 }
  0xf9   :  { %vm934_vm11 = vcmp.eq.f32.partialorder %v3860_v39, inf  ;;  %v937_v20 = vand.u32 2147483648, %v3860_v39  ;;  %v2797_v12 = vpop.eup %2796  ;;  %v905_v6 = vmul.f32 %v2789_v61, %v3830_v14  ;;  %v912_v29 = vmul.f32 %v2791_v5, %v3838_v23 }
  0xfa   :  { %vm929_vm12 = vcmp.eq.f32.partialorder %v3852_v16, 0.0  ;;  %v944_v58 = vand.u32 2147483648, %v3864_v0  ;;  %v2799_v38 = vpop.eup %2798  ;;  %v919_v37 = vmul.f32 %v2793_v45, %v3844_v42  ;;  %v951_v10 = vand.u32 2147483648, %v3867_v49 }
  0xfb   :  { %2812 = vrsqrt.f32 %v3887_v8  ;;  %v2801_v27 = vpop.eup %2800  ;;  %v893_v54 = vsel %vm892_vm0, %v3814_v63, %v891_v60  ;;  %v900_v32 = vsel %vm899_vm1, %v3822_v59, %v898_v33  ;;  %v926_v17 = vmul.f32 %v2795_v13, %v3852_v16 }
  0xfc   :  { %vm936_vm13 = vcmp.eq.f32.partialorder %v3860_v39, 0.0  ;;  %v958_v57 = vand.u32 2147483648, %v3870_v31  ;;  %v2803_v2 = vpop.eup %2802  ;;  %vm943_vm15 = vcmp.eq.f32.partialorder %v3864_v0, 0.0  ;;  %v965_v30 = vand.u32 2147483648, %v3874_v55 }
  0xfd   :  { %v972_v34 = vand.u32 2147483648, %v3877_v62  ;;  %2814 = vrsqrt.f32 %v3890_v25  ;;  %v907_v36 = vsel %vm906_vm4, %v3830_v14, %v905_v6  ;;  %v914_v9 = vsel %vm913_vm5, %v3838_v23, %v912_v29 }
  0xfe   :  { %v933_v50 = vmul.f32 %v2797_v12, %v3860_v39  ;;  %vm950_vm0 = vcmp.eq.f32.partialorder %v3867_v49, 0.0  ;;  %vm957_vm1 = vcmp.eq.f32.partialorder %v3870_v31, 0.0  ;;  %vm969_vm14 = vcmp.eq.f32.partialorder %v3877_v62, inf  ;;  %v2805_v61 = vpop.eup %2804 }
  0xff   :  { %v979_v51 = vand.u32 2147483648, %v3880_v3  ;;  %v4007_v5 = vsel %vm894_vm2, %v895_v24, %v893_v54  ;;  %v4011_v45 = vsel %vm901_vm3, %v902_v28, %v900_v32  ;;  %v921_v60 = vsel %vm920_vm6, %v3844_v42, %v919_v37  ;;  %v2807_v13 = vpop.eup %2806 }
 0x100   :  { %v940_v33 = vmul.f32 %v2799_v38, %v3864_v0  ;;  %vm976_vm4 = vcmp.eq.f32.partialorder %v3880_v3, inf  ;;  %v928_v12 = vsel %vm927_vm10, %v3852_v16, %v926_v17  ;;  %v947_v63 = vmul.f32 %v2801_v27, %v3867_v49  ;;  %v2809_v59 = vpop.eup %2808 }
 0x101   :  { %v954_v24 = vmul.f32 %v2803_v2, %v3870_v31  ;;  %vm964_vm2 = vcmp.eq.f32.partialorder %v3874_v55, 0.0  ;;  %vm983_vm3 = vcmp.eq.f32.partialorder %v3884_v48, inf  ;;  %v4029_v28 = vsel %vm908_vm7, %v909_v7, %v907_v36 }
 0x102   :  { %v4033_v6 = vsel %vm915_vm8, %v916_v44, %v914_v9  ;;  %vm971_vm5 = vcmp.eq.f32.partialorder %v3877_v62, 0.0  ;;  %v986_v29 = vand.u32 2147483648, %v3884_v48  ;;  %2816 = vrsqrt.f32 %v3894_v40  ;;  %v2811_v38 = vpop.eup %2810 }
 0x103   :  { %v4040_v37 = vsel %vm922_vm9, %v923_v35, %v921_v60  ;;  %v935_v14 = vsel %vm934_vm11, %v3860_v39, %v933_v50  ;;  %v961_v7 = vmul.f32 %v2805_v61, %v3874_v55  ;;  %vm978_vm6 = vcmp.eq.f32.partialorder %v3880_v3, 0.0 }
 0x104   :  { %2818 = vrsqrt.f32 %v3897_v43  ;;  %v4050_v23 = vsel %vm929_vm12, %v930_v1, %v928_v12  ;;  %vm5128_vm7 = vcmp.eq.f32.partialorder %v3864_v0, inf  ;;  %v968_v44 = vmul.f32 %v2807_v13, %v3877_v62 }
 0x105   :  { %v942_v42 = vsel %vm5128_vm7, %v3864_v0, %v940_v33  ;;  %vm985_vm8 = vcmp.eq.f32.partialorder %v3884_v48, 0.0  ;;  %2820 = vrsqrt.f32 %v3900_v26  ;;  %vm5129_vm9 = vcmp.eq.f32.partialorder %v3867_v49, inf  ;;  %v2813_v27 = vpop.eup %2812 }
 0x106   :  { %v949_v35 = vsel %vm5129_vm9, %v3867_v49, %v947_v63  ;;  %vm5130_vm10 = vcmp.eq.f32.partialorder %v3870_v31, inf  ;;  %v975_v1 = vmul.f32 %v2809_v59, %v3880_v3  ;;  %2822 = vrsqrt.f32 %v3904_v18 }
 0x107   :  { %v956_v16 = vsel %vm5130_vm10, %v3870_v31, %v954_v24  ;;  %v4070_v54 = vsel %vm936_vm13, %v937_v20, %v935_v14  ;;  %v982_v32 = vmul.f32 %v2811_v38, %v3884_v48  ;;  %vm990_vm11 = vcmp.eq.f32.partialorder %v3887_v8, inf  ;;  %v2815_v20 = vpop.eup %2814 }
 0x108   :  { %2824 = vrsqrt.f32 %v3907_v46  ;;  %v4079_v17 = vsel %vm943_vm15, %v944_v58, %v942_v42  ;;  %vm5131_vm12 = vcmp.eq.f32.partialorder %v3874_v55, inf  ;;  %vm992_vm7 = vcmp.eq.f32.partialorder %v3887_v8, 0.0 }
 0x109   :  { %v963_v2 = vsel %vm5131_vm12, %v3874_v55, %v961_v7  ;;  %v993_v39 = vand.u32 2147483648, %v3887_v8  ;;  %2826 = vrsqrt.f32 %v3910_v53  ;;  %v4091_v36 = vsel %vm950_vm0, %v951_v10, %v949_v35 }
 0x10a   :  { %v4095_v0 = vsel %vm957_vm1, %v958_v57, %v956_v16  ;;  %v970_v58 = vsel %vm969_vm14, %v3877_v62, %v968_v44  ;;  %2828 = vrsqrt.f32 %v3914_v4  ;;  %v977_v9 = vsel %vm976_vm4, %v3880_v3, %v975_v1 }
 0x10b   :  { %v989_v50 = vmul.f32 %v2813_v27, %v3887_v8  ;;  %vm997_vm13 = vcmp.eq.f32.partialorder %v3890_v25, inf  ;;  %2830 = vrsqrt.f32 %v3917_v47  ;;  %v4111_v49 = vsel %vm964_vm2, %v965_v30, %v963_v2 }
 0x10c   :  { %v984_v31 = vsel %vm983_vm3, %v3884_v48, %v982_v32  ;;  %vm999_vm14 = vcmp.eq.f32.partialorder %v3890_v25, 0.0  ;;  %2832 = vrsqrt.f32 %v3920_v21  ;;  %v4122_v10 = vsel %vm971_vm5, %v972_v34, %v970_v58  ;;  %v2817_v30 = vpop.eup %2816 }
 0x10d   :  { %v996_v57 = vmul.f32 %v2815_v20, %v3890_v25  ;;  %v1000_v55 = vand.u32 2147483648, %v3890_v25  ;;  %2834 = vrsqrt.f32 %v3924_v52  ;;  %v4131_v61 = vsel %vm978_vm6, %v979_v51, %v977_v9 }
 0x10e   :  { %vm1004_vm15 = vcmp.eq.f32.partialorder %v3894_v40, inf  ;;  %v1007_v60 = vand.u32 2147483648, %v3894_v40  ;;  %2836 = vrsqrt.f32 %v3927_v22  ;;  %v2819_v62 = vpop.eup %2818  ;;  %v4138_v34 = vsel %vm985_vm8, %v986_v29, %v984_v31 }
 0x10f   :  { %v991_v33 = vsel %vm990_vm11, %v3887_v8, %v989_v50  ;;  %vm1006_vm0 = vcmp.eq.f32.partialorder %v3894_v40, 0.0  ;;  %vm1011_vm1 = vcmp.eq.f32.partialorder %v3897_v43, inf  ;;  %v1014_v3 = vand.u32 2147483648, %v3897_v43  ;;  %v2821_v51 = vpop.eup %2820 }
 0x110   :  { %vm1018_vm4 = vcmp.eq.f32.partialorder %v3900_v26, inf  ;;  %v1021_v13 = vand.u32 2147483648, %v3900_v26  ;;  %vm1025_vm2 = vcmp.eq.f32.partialorder %v3904_v18, inf  ;;  %2838 = vrsqrt.f32 %v3930_v11  ;;  %v2823_v48 = vpop.eup %2822 }
 0x111   :  { %v998_v12 = vsel %vm997_vm13, %v3890_v25, %v996_v57  ;;  %v1003_v63 = vmul.f32 %v2817_v30, %v3894_v40  ;;  %vm1013_vm3 = vcmp.eq.f32.partialorder %v3897_v43, 0.0  ;;  %v1028_v24 = vand.u32 2147483648, %v3904_v18 }
 0x112   :  { %vm1032_vm5 = vcmp.eq.f32.partialorder %v3907_v46, inf  ;;  %v2825_v59 = vpop.eup %2824  ;;  %v4159_v29 = vsel %vm992_vm7, %v993_v39, %v991_v33  ;;  %vm1020_vm6 = vcmp.eq.f32.partialorder %v3900_v26, 0.0  ;;  %v1035_v38 = vand.u32 2147483648, %v3907_v46 }
 0x113   :  { %vm1039_vm8 = vcmp.eq.f32.partialorder %v3910_v53, inf  ;;  %v1042_v14 = vand.u32 2147483648, %v3910_v53  ;;  %v2827_v7 = vpop.eup %2826  ;;  %v1010_v42 = vmul.f32 %v2819_v62, %v3897_v43  ;;  %vm1027_vm9 = vcmp.eq.f32.partialorder %v3904_v18, 0.0 }
 0x114   :  { %vm1034_vm10 = vcmp.eq.f32.partialorder %v3907_v46, 0.0  ;;  %vm1046_vm11 = vcmp.eq.f32.partialorder %v3914_v4, inf  ;;  %v1049_v8 = vand.u32 2147483648, %v3914_v4  ;;  %2840 = vrsqrt.f32 %v3934_v15  ;;  %v2829_v44 = vpop.eup %2828 }
 0x115   :  { %v4173_v35 = vsel %vm999_vm14, %v1000_v55, %v998_v12  ;;  %v1017_v16 = vmul.f32 %v2821_v51, %v3900_v26  ;;  %v1056_v1 = vand.u32 2147483648, %v3917_v47  ;;  %v2831_v27 = vpop.eup %2830  ;;  %v1005_v32 = vsel %vm1004_vm15, %v3894_v40, %v1003_v63 }
 0x116   :  { %v1024_v2 = vmul.f32 %v2823_v48, %v3904_v18  ;;  %v1031_v39 = vmul.f32 %v2825_v59, %v3907_v46  ;;  %2842 = vrsqrt.f32 %v3937_v19  ;;  %v2833_v25 = vpop.eup %2832  ;;  %vm1048_vm13 = vcmp.eq.f32.partialorder %v3914_v4, 0.0 }
 0x117   :  { %vm1060_vm14 = vcmp.eq.f32.partialorder %v3920_v21, inf  ;;  %v1063_v20 = vand.u32 2147483648, %v3920_v21  ;;  %vm1067_vm12 = vcmp.eq.f32.partialorder %v3924_v52, inf  ;;  %2844 = vrsqrt.f32 %v3940_v56  ;;  %v2835_v58 = vpop.eup %2834 }
 0x118   :  { %v1012_v9 = vsel %vm1011_vm1, %v3897_v43, %v1010_v42  ;;  %v1038_v50 = vmul.f32 %v2827_v7, %v3910_v53  ;;  %vm1062_vm7 = vcmp.eq.f32.partialorder %v3920_v21, 0.0  ;;  %v1070_v31 = vand.u32 2147483648, %v3924_v52  ;;  %v2837_v57 = vpop.eup %2836 }
 0x119   :  { %2846 = vrsqrt.f32 %v3943_v41  ;;  %v4200_v55 = vsel %vm1006_vm0, %v1007_v60, %v1005_v32  ;;  %v1019_v30 = vsel %vm1018_vm4, %v3900_v26, %v1017_v16  ;;  %v1045_v62 = vmul.f32 %v2829_v44, %v3914_v4 }
 0x11a   :  { %vm1069_vm1 = vcmp.eq.f32.partialorder %v3924_v52, 0.0  ;;  %vm1074_vm15 = vcmp.eq.f32.partialorder %v3927_v22, inf  ;;  %v1026_v33 = vsel %vm1025_vm2, %v3904_v18, %v1024_v2  ;;  %v1033_v40 = vsel %vm1032_vm5, %v3907_v46, %v1031_v39  ;;  %v2839_v48 = vpop.eup %2838 }
 0x11b   :  { %v1052_v60 = vmul.f32 %v2831_v27, %v3917_v47  ;;  %v1059_v51 = vmul.f32 %v2833_v25, %v3920_v21  ;;  %vm1076_vm0 = vcmp.eq.f32.partialorder %v3927_v22, 0.0  ;;  %v4219_v12 = vsel %vm1013_vm3, %v1014_v3, %v1012_v9 }
 0x11c   :  { %v1066_v63 = vmul.f32 %v2835_v58, %v3924_v52  ;;  %v1077_v59 = vand.u32 2147483648, %v3927_v22  ;;  %vm1081_vm4 = vcmp.eq.f32.partialorder %v3930_v11, inf  ;;  %v4228_v7 = vsel %vm1020_vm6, %v1021_v13, %v1019_v30 }
 0x11d   :  { %v1040_v42 = vsel %vm1039_vm8, %v3910_v53, %v1038_v50  ;;  %v1073_v43 = vmul.f32 %v2837_v57, %v3927_v22  ;;  %vm1083_vm2 = vcmp.eq.f32.partialorder %v3930_v11, 0.0  ;;  %v1029_v3 = vsel %vm1027_vm9, %v1028_v24, %v1026_v33 }
 0x11e   :  { %v4239_v44 = vsel %vm1034_vm10, %v1035_v38, %v1033_v40  ;;  %v1047_v26 = vsel %vm1046_vm11, %v3914_v4, %v1045_v62  ;;  %v1084_v13 = vand.u32 2147483648, %v3930_v11  ;;  %v2841_v16 = vpop.eup %2840  ;;  %vm5132_vm3 = vcmp.eq.f32.partialorder %v3917_v47, inf }
 0x11f   :  { %v1054_v27 = vsel %vm5132_vm3, %v3917_v47, %v1052_v60  ;;  %v1061_v18 = vsel %vm1060_vm14, %v3920_v21, %v1059_v51  ;;  %v1080_v24 = vmul.f32 %v2839_v48, %v3930_v11  ;;  %vm1088_vm5 = vcmp.eq.f32.partialorder %v3934_v15, inf }
 0x120   :  { %vm5133_vm6 = vcmp.eq.f32.partialorder %v3910_v53, 0.0  ;;  %v1068_v38 = vsel %vm1067_vm12, %v3924_v52, %v1066_v63  ;;  %vm1090_vm8 = vcmp.eq.f32.partialorder %v3934_v15, 0.0  ;;  %v1091_v32 = vand.u32 2147483648, %v3934_v15  ;;  %v2843_v2 = vpop.eup %2842 }
 0x121   :  { %v1043_v46 = vsel %vm5133_vm6, %v1042_v14, %v1040_v42  ;;  %v1050_v39 = vsel %vm1048_vm13, %v1049_v8, %v1047_v26  ;;  %v1075_v25 = vsel %vm1074_vm15, %v3927_v22, %v1073_v43  ;;  %vm1095_vm9 = vcmp.eq.f32.partialorder %v3937_v19, inf  ;;  %v2845_v14 = vpop.eup %2844 }
 0x122   :  { %v1098_v53 = vand.u32 2147483648, %v3937_v19  ;;  %vm5134_vm10 = vcmp.eq.f32.partialorder %v3917_v47, 0.0  ;;  %v1064_v9 = vsel %vm1062_vm7, %v1063_v20, %v1061_v18  ;;  %v1087_v50 = vmul.f32 %v2841_v16, %v3934_v15 }
 0x123   :  { %v1057_v58 = vsel %vm5134_vm10, %v1056_v1, %v1054_v27  ;;  %vm1097_vm11 = vcmp.eq.f32.partialorder %v3937_v19, 0.0  ;;  %vm1102_vm12 = vcmp.eq.f32.partialorder %v3940_v56, inf  ;;  %v2847_v4 = vpop.eup %2846  ;;  %v1071_v8 = vsel %vm1069_vm1, %v1070_v31, %v1068_v38 }
 0x124   :  { %v1082_v57 = vsel %vm1081_vm4, %v3930_v11, %v1080_v24  ;;  %vm1104_vm13 = vcmp.eq.f32.partialorder %v3940_v56, 0.0  ;;  %v1105_v47 = vand.u32 2147483648, %v3940_v56  ;;  %vm1109_vm7 = vcmp.eq.f32.partialorder %v3943_v41, inf }
 0x125   :  { %v1078_v21 = vsel %vm1076_vm0, %v1077_v59, %v1075_v25  ;;  %v1094_v1 = vmul.f32 %v2843_v2, %v3937_v19  ;;  %vm1111_vm14 = vcmp.eq.f32.partialorder %v3943_v41, 0.0  ;;  %v1112_v52 = vand.u32 2147483648, %v3943_v41 }
 0x126   :  { %v4288_v20 = vmul.f32 2.5, %v4007_v5  ;;  %v1101_v31 = vmul.f32 %v2845_v14, %v3940_v56  ;;  %v4292_v30 = vmul.f32 2.5, %v4011_v45  ;;  %v4295_v62 = vmul.f32 2.5, %v4029_v28 }
 0x127   :  { %v4298_v22 = vmul.f32 2.5, %v4033_v6  ;;  %v1085_v33 = vsel %vm1083_vm2, %v1084_v13, %v1082_v57  ;;  %v1089_v40 = vsel %vm1088_vm5, %v3934_v15, %v1087_v50  ;;  %v1108_v5 = vmul.f32 %v2847_v4, %v3943_v41 }
 0x128   :  { %v4307_v60 = vmul.f32 2.5, %v4040_v37  ;;  %v4310_v45 = vmul.f32 2.5, %v4050_v23  ;;  %v4313_v28 = vmul.f32 2.5, %v4070_v54  ;;  %v4316_v6 = vmul.f32 2.5, %v4079_v17 }
 0x129   :  { %v4319_v11 = vmul.f32 2.5, %v4091_v36  ;;  %v1096_v51 = vsel %vm1095_vm9, %v3937_v19, %v1094_v1  ;;  %v4325_v48 = vmul.f32 2.5, %v4095_v0  ;;  %v4328_v37 = vmul.f32 2.5, %v4111_v49 }
 0x12a   :  { %v4331_v23 = vmul.f32 2.5, %v4122_v10  ;;  %v1092_v54 = vsel %vm1090_vm8, %v1091_v32, %v1089_v40  ;;  %v1103_v17 = vsel %vm1102_vm12, %v3940_v56, %v1101_v31  ;;  %v4339_v36 = vmul.f32 2.5, %v4131_v61  ;;  %v5135_v31 = vld [vmem:[#allocation11_spill] sm:$0xff] }
 0x12b   :  { %v4342_v63 = vmul.f32 2.5, %v4138_v34  ;;  %v1110_v0 = vsel %vm1109_vm7, %v3943_v41, %v1108_v5  ;;  %v4348_v49 = vmul.f32 2.5, %v4159_v29  ;;  %v4351_v15 = vmul.f32 2.5, %v4173_v35 }
 0x12c   :  { %v4354_v10 = vmul.f32 2.5, %v4200_v55  ;;  %v1099_v61 = vsel %vm1097_vm11, %v1098_v53, %v1096_v51  ;;  %v4359_v59 = vmul.f32 2.5, %v4219_v12  ;;  %v4362_v34 = vmul.f32 2.5, %v4228_v7 }
 0x12d   :  { %v4364_v42 = vmul.f32 2.5, %v1029_v3  ;;  %v1106_v29 = vsel %vm1104_vm13, %v1105_v47, %v1103_v17  ;;  %v4369_v35 = vmul.f32 2.5, %v4239_v44  ;;  %v4371_v43 = vmul.f32 2.5, %v1043_v46 }
 0x12e   :  { %v4373_v55 = vmul.f32 2.5, %v1050_v39  ;;  %v1113_v19 = vsel %vm1111_vm14, %v1112_v52, %v1110_v0  ;;  %v4377_v12 = vmul.f32 2.5, %v1057_v58  ;;  %v4379_v26 = vmul.f32 2.5, %v1064_v9 }
 0x12f   :  { %v4381_v7 = vmul.f32 2.5, %v1071_v8  ;;  %v4383_v3 = vmul.f32 2.5, %v1078_v21  ;;  %v4385_v56 = vmul.f32 2.5, %v1085_v33  ;;  %v4387_v13 = vmul.f32 2.5, %v1092_v54  ;;  %v2682_v21 = vld [vmem:[%s4966_s1 + $0x10] sm:$0xff] }
 0x130   :  { %v4389_v44 = vmul.f32 2.5, %v1099_v61  ;;  %v4391_v16 = vmul.f32 2.5, %v1106_v29  ;;  %v1146_v27 = vsub.f32 1.0, %v4288_v20  ;;  %v1147_v41 = vsub.f32 1.0, %v4292_v30 }
 0x131   :  { %v1148_v18 = vsub.f32 1.0, %v4295_v62  ;;  %v4396_v24 = vmul.f32 2.5, %v1113_v19  ;;  %v1149_v46 = vsub.f32 1.0, %v4298_v22  ;;  %v1150_v38 = vsub.f32 1.0, %v4307_v60 }
 0x132   :  { %v1151_v32 = vsub.f32 1.0, %v4310_v45  ;;  %v1152_v2 = vsub.f32 1.0, %v4313_v28  ;;  %v1153_v39 = vsub.f32 1.0, %v4316_v6  ;;  %v1154_v25 = vsub.f32 1.0, %v4319_v11 }
 0x133   :  { %v1155_v53 = vsub.f32 1.0, %v4325_v48  ;;  %v1156_v14 = vsub.f32 1.0, %v4328_v37  ;;  %v1157_v58 = vsub.f32 1.0, %v4331_v23  ;;  %v1158_v9 = vsub.f32 1.0, %v4339_v36 }
 0x134   :  { %v1159_v50 = vsub.f32 1.0, %v4342_v63  ;;  %v1160_v4 = vsub.f32 1.0, %v4348_v49  ;;  %v1161_v8 = vsub.f32 1.0, %v4351_v15  ;;  %v1162_v57 = vsub.f32 1.0, %v4354_v10 }
 0x135   :  { %v1163_v47 = vsub.f32 1.0, %v4359_v59  ;;  %v1164_v1 = vsub.f32 1.0, %v4362_v34  ;;  %v1165_v52 = vsub.f32 1.0, %v4364_v42  ;;  %v1166_v20 = vsub.f32 1.0, %v4369_v35  ;;  %v2683_v59 = vld [vmem:[%s4966_s1 + $0x18] sm:$0xff] }
 0x136   :  { %v1501_v30 = vrot.slane %v2682_v21, %v5135_v31  ;;  %v1167_v62 = vsub.f32 1.0, %v4371_v43  ;;  %v1168_v22 = vsub.f32 1.0, %v4373_v55  ;;  %v1169_v33 = vsub.f32 1.0, %v4377_v12 }
 0x137   :  { %v1170_v40 = vsub.f32 1.0, %v4379_v26  ;;  %v1171_v5 = vsub.f32 1.0, %v4381_v7  ;;  %v1172_v60 = vsub.f32 1.0, %v4383_v3  ;;  %v1173_v45 = vsub.f32 1.0, %v4385_v56 }
 0x138   :  { %v1174_v28 = vsub.f32 1.0, %v4387_v13  ;;  %v1175_v6 = vsub.f32 1.0, %v4389_v44  ;;  %v1176_v11 = vsub.f32 1.0, %v4391_v16  ;;  %v1177_v51 = vsub.f32 1.0, %v4396_v24 }
 0x139   :  { %v1494_v48 = vcombine.high %v2682_v21, %v2682_v21  ;;  %v4431_v37 = vmax.f32 %v1146_v27, 0.0  ;;  %v4433_v23 = vmax.f32 %v1147_v41, 0.0  ;;  %v4435_v54 = vmax.f32 %v1148_v18, 0.0  ;;  %v4506_v21 = vld [vmem:[%s4966_s1 + $0x20] sm:$0xff] }
 0x13a   :  { %v1509_v17 = vcombine.high %v1501_v30, %v1501_v30  ;;  %v4437_v36 = vmax.f32 %v1149_v46, 0.0  ;;  %v4439_v63 = vmax.f32 %v1150_v38, 0.0  ;;  %v4441_v0 = vmax.f32 %v1151_v32, 0.0 }
 0x13b   :  { %v4443_v49 = vmax.f32 %v1152_v2, 0.0  ;;  %v4445_v15 = vmax.f32 %v1153_v39, 0.0  ;;  %v4447_v10 = vmax.f32 %v1154_v25, 0.0  ;;  %v4449_v61 = vmax.f32 %v1155_v53, 0.0  ;;  %v5141_v39 = vld [vmem:[#allocation12_spill] sm:$0xff] }
 0x13c   :  { %5136 = vst [vmem:[#allocation24_spill] sm:$0xff] %v4441_v0  ;;  %v1517_v34 = vrot.slane %v1501_v30, %v5135_v31  ;;  %v4455_v42 = vmax.f32 %v1156_v14, 0.0  ;;  %v4457_v29 = vmax.f32 %v1157_v58, 0.0  ;;  %v4459_v35 = vmax.f32 %v1158_v9, 0.0 }
 0x13d   :  { %5137 = vst [vmem:[#allocation25_spill] sm:$0xff] %v4445_v15  ;;  %5138 = vst [vmem:[#allocation26_spill] sm:$0xff] %v4447_v10  ;;  %v1508_v43 = vrot.slane %v1494_v48, %v5135_v31  ;;  %v4462_v55 = vmax.f32 %v1159_v50, 0.0  ;;  %v4464_v19 = vmax.f32 %v1160_v4, 0.0  ;;  %v4466_v12 = vmax.f32 %v1161_v8, 0.0 }
 0x13e   :  { %5139 = vst [vmem:[#allocation27_spill] sm:$0xff] %v4455_v42  ;;  %v1531_v26 = vrot.slane %v1509_v17, %v5135_v31  ;;  %v4469_v7 = vmax.f32 %v1162_v57, 0.0  ;;  %v4471_v3 = vmax.f32 %v1163_v47, 0.0  ;;  %v4473_v56 = vmax.f32 %v1164_v1, 0.0 }
 0x13f   :  { %5140 = vst [vmem:[#allocation28_spill] sm:$0xff] %v4464_v19  ;;  %v1543_v13 = vcombine.high %v2683_v59, %v2683_v59  ;;  %v4475_v44 = vmax.f32 %v1165_v52, 0.0  ;;  %v4477_v16 = vmax.f32 %v1166_v20, 0.0  ;;  %v4479_v27 = vmax.f32 %v1167_v62, 0.0 }
 0x140   :  { %v1539_v41 = vcombine.high %v1517_v34, %v1517_v34  ;;  %v4481_v18 = vmax.f32 %v1168_v22, 0.0  ;;  %v4483_v24 = vmax.f32 %v1169_v33, 0.0  ;;  %v4485_v46 = vmax.f32 %v1170_v40, 0.0 }
 0x141   :  { %v1510_v38 = vcombine.high %v1508_v43, %v1508_v43  ;;  %v4487_v32 = vmax.f32 %v1171_v5, 0.0  ;;  %v1541_v2 = vcombine.high %v1531_v26, %v1531_v26  ;;  %v1595_v25 = vrot.slane %v1517_v34, %v5141_v39 }
 0x142   :  { %v1599_v53 = vrot.slane %v1531_v26, %v5141_v39  ;;  %v4491_v14 = vmax.f32 %v1172_v60, 0.0  ;;  %v4493_v58 = vmax.f32 %v1173_v45, 0.0  ;;  %v1550_v9 = vrot.slane %v2683_v59, %v5135_v31 }
 0x143   :  { %v1557_v50 = vrot.slane %v1543_v13, %v5135_v31  ;;  %v4497_v4 = vmax.f32 %v1174_v28, 0.0  ;;  %v4499_v8 = vmax.f32 %v1175_v6, 0.0  ;;  %v1524_v57 = vrot.slane %v1508_v43, %v5135_v31 }
 0x144   :  { %v1603_v47 = vrot.slane %v1539_v41, %v5141_v39  ;;  %v4508_v1 = vmax.f32 %v1176_v11, 0.0  ;;  %v4510_v52 = vmax.f32 %v1177_v51, 0.0  ;;  %vm1424_vm15 = vcmask 523264  }
 0x145   :  { %v1538_v20 = vrot.slane %v1510_v38, %v5135_v31  ;;  %vm1456_vm1 = vcmask 522240   ;;  %v1607_v30 = vrot.slane %v1541_v2, %v5141_v39  ;;  %v1672_v62 = vmul.f32 %v1595_v25, %v4431_v37 }
 0x146   :  { %v1674_v22 = vmul.f32 %v1599_v53, %v4435_v54  ;;  %v1558_v33 = vcombine.high %v1550_v9, %v1550_v9  ;;  %v1559_v40 = vcombine.high %v1557_v50, %v1557_v50  ;;  %v1566_v5 = vrot.slane %v1550_v9, %v5135_v31 }
 0x147   :  { %v1540_v45 = vcombine.high %v1524_v57, %v1524_v57  ;;  %v1611_v28 = vrot.slane %v1524_v57, %v5141_v39  ;;  %v1676_v6 = vmul.f32 %v1603_v47, %v4439_v63  ;;  %v4523_v11 = vrot.slane %v4506_v21, %v5135_v31 }
 0x148   :  { %v1542_v51 = vcombine.high %v1538_v20, %v1538_v20  ;;  %v1573_v48 = vrot.slane %v1557_v50, %v5135_v31  ;;  %v1615_v17 = vrot.slane %v1538_v20, %v5141_v39  ;;  %v1673_v59 = vmul.f32 %v1595_v25, %v4433_v23 }
 0x149   :  { %v1675_v34 = vmul.f32 %v1599_v53, %v4437_v36  ;;  %v1678_v43 = vmul.f32 %v1607_v30, %v4443_v49  ;;  %v1704_v26 = vsel %vm1424_vm15, %v1672_v62, 0.0  ;;  %v1705_v13 = vsel %vm1424_vm15, %v1674_v22, 0.0 }
 0x14a   :  { %v1580_v41 = vrot.slane %v1558_v33, %v5135_v31  ;;  %v1587_v38 = vrot.slane %v1559_v40, %v5135_v31  ;;  %v1588_v2 = vcombine.high %v1566_v5, %v1566_v5  ;;  %v1706_v9 = vadd.f32 %v1705_v13, %v1704_v26 }
 0x14b   :  { %v1619_v50 = vrot.slane %v1540_v45, %v5141_v39  ;;  %v1677_v57 = vmul.f32 %v1603_v47, %v4441_v0  ;;  %v1680_v25 = vmul.f32 %v1611_v28, %v4447_v10  ;;  %v1707_v53 = vsel %vm1424_vm15, %v1676_v6, 0.0 }
 0x14c   :  { %v1589_v20 = vcombine.high %v1573_v48, %v1573_v48  ;;  %v1623_v60 = vrot.slane %v1542_v51, %v5141_v39  ;;  %v1679_v62 = vmul.f32 %v1607_v30, %v4445_v15  ;;  %v1708_v22 = vadd.f32 %v1707_v53, %v1706_v9 }
 0x14d   :  { %v1682_v33 = vmul.f32 %v1615_v17, %v4455_v42  ;;  %v1709_v40 = vsel %vm1424_vm15, %v1678_v43, 0.0  ;;  %v1735_v26 = vsel %vm1456_vm1, %v1673_v59, 0.0  ;;  %v1736_v45 = vsel %vm1456_vm1, %v1675_v34, 0.0 }
 0x14e   :  { %v1590_v13 = vcombine.high %v1580_v41, %v1580_v41  ;;  %v1627_v47 = vrot.slane %v1566_v5, %v5141_v39  ;;  %v1710_v10 = vadd.f32 %v1709_v40, %v1708_v22  ;;  %v1737_v0 = vadd.f32 %v1736_v45, %v1735_v26 }
 0x14f   :  { %v1681_v6 = vmul.f32 %v1611_v28, %v4449_v61  ;;  %v1684_v51 = vmul.f32 %v1619_v50, %v4459_v35  ;;  %v1711_v30 = vsel %vm1424_vm15, %v1680_v25, 0.0  ;;  %v1738_v9 = vsel %vm1456_vm1, %v1677_v57, 0.0 }
 0x150   :  { %v1591_v53 = vcombine.high %v1587_v38, %v1587_v38  ;;  %v1631_v43 = vrot.slane %v1580_v41, %v5141_v39  ;;  %v1712_v42 = vadd.f32 %v1711_v30, %v1710_v10  ;;  %v1739_v59 = vadd.f32 %v1738_v9, %v1737_v0 }
 0x151   :  { %v1683_v34 = vmul.f32 %v1615_v17, %v4457_v29  ;;  %v1686_v15 = vmul.f32 %v1623_v60, %v4464_v19  ;;  %v1713_v5 = vsel %vm1424_vm15, %v1682_v33, 0.0  ;;  %v1740_v22 = vsel %vm1456_vm1, %v1679_v62, 0.0 }
 0x152   :  { %v1635_v28 = vrot.slane %v1588_v2, %v5141_v39  ;;  %v1639_v40 = vrot.slane %v1590_v13, %v5141_v39  ;;  %v1714_v25 = vadd.f32 %v1713_v5, %v1712_v42  ;;  %v1741_v26 = vadd.f32 %v1740_v22, %v1739_v59 }
 0x153   :  { %v1685_v57 = vmul.f32 %v1619_v50, %v4462_v55  ;;  %v1688_v41 = vmul.f32 %v1627_v47, %v4469_v7  ;;  %v1715_v0 = vsel %vm1424_vm15, %v1684_v51, 0.0  ;;  %v1742_v10 = vsel %vm1456_vm1, %v1681_v6, 0.0 }
 0x154   :  { %v1643_v17 = vrot.slane %v1573_v48, %v5141_v39  ;;  %v1647_v33 = vrot.slane %v1587_v38, %v5141_v39  ;;  %v1716_v45 = vadd.f32 %v1715_v0, %v1714_v25  ;;  %v1743_v62 = vadd.f32 %v1742_v10, %v1741_v26 }
 0x155   :  { %v1687_v2 = vmul.f32 %v1623_v60, %v4466_v12  ;;  %v1690_v13 = vmul.f32 %v1631_v43, %v4473_v56  ;;  %v1717_v42 = vsel %vm1424_vm15, %v1686_v15, 0.0  ;;  %v1744_v50 = vsel %vm1456_vm1, %v1683_v34, 0.0 }
 0x156   :  { %v1651_v30 = vrot.slane %v1589_v20, %v5141_v39  ;;  %v1655_v51 = vrot.slane %v1591_v53, %v5141_v39  ;;  %v1718_v9 = vadd.f32 %v1717_v42, %v1716_v45  ;;  %v1745_v6 = vadd.f32 %v1744_v50, %v1743_v62  ;;  %v2689_v50 = vld [vmem:[%s4966_s1 + $0x28] sm:$0xff] }
 0x157   :  { %v1689_v48 = vmul.f32 %v1627_v47, %v4471_v3  ;;  %v1692_v38 = vmul.f32 %v1635_v28, %v4477_v16  ;;  %v1719_v59 = vsel %vm1424_vm15, %v1688_v41, 0.0  ;;  %v1746_v60 = vsel %vm1456_vm1, %v1685_v57, 0.0 }
 0x158   :  { %v1691_v5 = vmul.f32 %v1631_v43, %v4475_v44  ;;  %v1693_v15 = vmul.f32 %v1635_v28, %v4479_v27  ;;  %v1720_v22 = vadd.f32 %v1719_v59, %v1718_v9  ;;  %v1747_v34 = vadd.f32 %v1746_v60, %v1745_v6 }
 0x159   :  { %v1694_v20 = vmul.f32 %v1639_v40, %v4481_v18  ;;  %v1695_v53 = vmul.f32 %v1639_v40, %v4483_v24  ;;  %v1721_v25 = vsel %vm1424_vm15, %v1690_v13, 0.0  ;;  %v1748_v47 = vsel %vm1456_vm1, %v1687_v2, 0.0 }
 0x15a   :  { %v1696_v26 = vmul.f32 %v1643_v17, %v4485_v46  ;;  %v1697_v41 = vmul.f32 %v1643_v17, %v4487_v32  ;;  %v1722_v0 = vadd.f32 %v1721_v25, %v1720_v22  ;;  %v1749_v57 = vadd.f32 %v1748_v47, %v1747_v34 }
 0x15b   :  { %v1698_v43 = vmul.f32 %v1647_v33, %v4491_v14  ;;  %v1723_v28 = vsel %vm1424_vm15, %v1692_v38, 0.0  ;;  %v1750_v10 = vsel %vm1456_vm1, %v1689_v48, 0.0  ;;  %v1942_v45 = vcombine.high %v4523_v11, %v4523_v11 }
 0x15c   :  { %v1699_v40 = vmul.f32 %v1647_v33, %v4493_v58  ;;  %v1700_v62 = vmul.f32 %v1651_v30, %v4497_v4  ;;  %v1724_v2 = vadd.f32 %v1723_v28, %v1722_v0  ;;  %v1751_v13 = vadd.f32 %v1750_v10, %v1749_v57 }
 0x15d   :  { %v1725_v42 = vsel %vm1424_vm15, %v1694_v20, 0.0  ;;  %v1752_v17 = vsel %vm1456_vm1, %v1691_v5, 0.0  ;;  %v5142_v9 = vcombine.high %v4506_v21, %v4506_v21  ;;  %v1950_v33 = vrot.slane %v4523_v11, %v5135_v31 }
 0x15e   :  { %v1701_v48 = vmul.f32 %v1651_v30, %v4499_v8  ;;  %v1702_v38 = vmul.f32 %v1655_v51, %v4508_v1  ;;  %v1726_v59 = vadd.f32 %v1725_v42, %v1724_v2  ;;  %v1753_v60 = vadd.f32 %v1752_v17, %v1751_v13 }
 0x15f   :  { %v1941_v6 = vrot.slane %v5142_v9, %v5135_v31  ;;  %v1703_v5 = vmul.f32 %v1655_v51, %v4510_v52  ;;  %v1727_v22 = vsel %vm1424_vm15, %v1696_v26, 0.0  ;;  %v1754_v34 = vsel %vm1456_vm1, %v1693_v15, 0.0 }
 0x160   :  { %v1964_v20 = vrot.slane %v1942_v45, %v5135_v31  ;;  %v1728_v25 = vadd.f32 %v1727_v22, %v1726_v59  ;;  %v1729_v21 = vsel %vm1424_vm15, %v1698_v43, 0.0  ;;  %v1755_v47 = vadd.f32 %v1754_v34, %v1753_v60 }
 0x161   :  { %vm1772_vm0 = vcmask 1046528   ;;  %v1976_v11 = vcombine.high %v2689_v50, %v2689_v50  ;;  %v1756_v30 = vsel %vm1456_vm1, %v1695_v53, 0.0  ;;  %v1943_v0 = vcombine.high %v1941_v6, %v1941_v6 }
 0x162   :  { %v1972_v57 = vcombine.high %v1950_v33, %v1950_v33  ;;  %v1983_v28 = vrot.slane %v2689_v50, %v5135_v31  ;;  %v1730_v10 = vadd.f32 %v1729_v21, %v1728_v25  ;;  %v1731_v51 = vsel %vm1424_vm15, %v1700_v62, 0.0 }
 0x163   :  { %v1757_v26 = vadd.f32 %v1756_v30, %v1755_v47  ;;  %v2028_v15 = vrot.slane %v1950_v33, %v5141_v39  ;;  %v1758_v45 = vsel %vm1456_vm1, %v1697_v41, 0.0  ;;  %v1957_v2 = vrot.slane %v1941_v6, %v5135_v31 }
 0x164   :  { %v1974_v43 = vcombine.high %v1964_v20, %v1964_v20  ;;  %v2032_v13 = vrot.slane %v1964_v20, %v5141_v39  ;;  %v1732_v42 = vadd.f32 %v1731_v51, %v1730_v10  ;;  %v1733_v53 = vsel %vm1424_vm15, %v1702_v38, 0.0 }
 0x165   :  { %v1759_v17 = vadd.f32 %v1758_v45, %v1757_v26  ;;  %v1990_v9 = vrot.slane %v1976_v11, %v5135_v31  ;;  %v1760_v50 = vsel %vm1456_vm1, %v1699_v40, 0.0  ;;  %v1971_v62 = vrot.slane %v1943_v0, %v5135_v31 }
 0x166   :  { %v1991_v59 = vcombine.high %v1983_v28, %v1983_v28  ;;  %v2036_v33 = vrot.slane %v1972_v57, %v5141_v39  ;;  %v1762_v41 = vsel %vm1456_vm1, %v1701_v48, 0.0  ;;  %v1999_v6 = vrot.slane %v1983_v28, %v5135_v31 }
 0x167   :  { %v1761_v60 = vadd.f32 %v1760_v50, %v1759_v17  ;;  %v2105_v22 = vmul.f32 %v2028_v15, %v4431_v37  ;;  %v1764_v34 = vsel %vm1456_vm1, %v1703_v5, 0.0  ;;  %v1973_v38 = vcombine.high %v1957_v2, %v1957_v2 }
 0x168   :  { %v2040_v20 = vrot.slane %v1974_v43, %v5141_v39  ;;  %v2107_v25 = vmul.f32 %v2032_v13, %v4435_v54  ;;  %v1734_v40 = vadd.f32 %v1733_v53, %v1732_v42  ;;  %v1992_v47 = vcombine.high %v1990_v9, %v1990_v9 }
 0x169   :  { %v1763_v21 = vadd.f32 %v1762_v41, %v1761_v60  ;;  %v4624_v11 = vrot.slane %v1990_v9, %v5135_v31  ;;  %v1975_v30 = vcombine.high %v1971_v62, %v1971_v62  ;;  %v2013_v48 = vrot.slane %v1991_v59, %v5135_v31  ;;  %v5145_v59 = vld [vmem:[#allocation24_spill] sm:$0xff]  ;;  %v5146_v41 = vld [vmem:[#allocation26_spill] sm:$0xff] }
 0x16a   :  { %v2044_v0 = vrot.slane %v1957_v2, %v5141_v39  ;;  %v2109_v57 = vmul.f32 %v2036_v33, %v4439_v63  ;;  %v2021_v5 = vcombine.high %v1999_v6, %v1999_v6  ;;  %v2048_v10 = vrot.slane %v1971_v62, %v5141_v39 }
 0x16b   :  { %v1765_v28 = vadd.f32 %v1764_v34, %v1763_v21  ;;  %v2137_v51 = vsel %vm1424_vm15, %v2105_v22, 0.0  ;;  %vm2929_vm4 = vmmov 1   ;;  %v2106_v45 = vmul.f32 %v2028_v15, %v4433_v23 }
 0x16c   :  { %vm4632_vm2 = vmpackc.low %vm1772_vm0, %vm2929_vm4  ;;  %v2108_v43 = vmul.f32 %v2032_v13, %v4437_v36  ;;  %v2111_v2 = vmul.f32 %v2040_v20, %v4443_v49  ;;  %v2138_v42 = vsel %vm1424_vm15, %v2107_v25, 0.0  ;;  %v4641_v17 = vrot.slane %v1992_v47, %v5135_v31  ;;  %v5147_v25 = vld [vmem:[#allocation25_spill] sm:$0xff]  ;;  %v5148_v47 = vld [vmem:[#allocation27_spill] sm:$0xff] }
 0x16d   :  { %v2737_v53 = vpack.c.bf16 %v1765_v28, %v1734_v40  ;;  %v2139_v50 = vadd.f32 %v2138_v42, %v2137_v51  ;;  %v2052_v62 = vrot.slane %v1973_v38, %v5141_v39  ;;  %v2110_v60 = vmul.f32 %v2036_v33, %v5145_v59 }
 0x16e   :  { %v2113_v15 = vmul.f32 %v2044_v0, %v5146_v41  ;;  %v2140_v13 = vsel %vm1424_vm15, %v2109_v57, 0.0  ;;  %v2023_v22 = vcombine.high %v2013_v48, %v2013_v48  ;;  %v2056_v34 = vrot.slane %v1975_v30, %v5141_v39 }
 0x16f   :  { %2739 = vmatpush3.bf16.msk.msra.mxu1 %vm4632_vm2, %v2737_v53  ;;  %v2112_v40 = vmul.f32 %v2040_v20, %v5147_v25  ;;  %v2141_v21 = vadd.f32 %v2140_v13, %v2139_v50  ;;  %v2115_v28 = vmul.f32 %v2048_v10, %v5148_v47  ;;  %v2142_v51 = vsel %vm1424_vm15, %v2111_v2, 0.0 }
 0x170   :  { %v2168_v38 = vsel %vm1456_vm1, %v2106_v45, 0.0  ;;  %v2169_v33 = vsel %vm1456_vm1, %v2108_v43, 0.0  ;;  %v5149_v42 = vmov 0.0|0.0   ;;  %v2024_v57 = vcombine.high %v4641_v17, %v4641_v17 }
 0x171   :  { %2740 = vmatprep.subr.bf16.mxu1 %v5149_v42  ;;  %v2060_v53 = vrot.slane %v1999_v6, %v5141_v39  ;;  %v2143_v9 = vadd.f32 %v2142_v51, %v2141_v21  ;;  %v2170_v30 = vadd.f32 %v2169_v33, %v2168_v38  ;;  %v2114_v20 = vmul.f32 %v2044_v0, %v4449_v61  ;;  %v1767_v33 = vld [vmem:[#allocation5 + $0x8] sm:$0xff] }
 0x172   :  { %v2117_v50 = vmul.f32 %v2052_v62, %v4459_v35  ;;  %v2144_v13 = vsel %vm1424_vm15, %v2113_v15, 0.0  ;;  %v2171_v2 = vsel %vm1456_vm1, %v2110_v60, 0.0  ;;  %v2064_v45 = vrot.slane %v2013_v48, %v5141_v39 }
 0x173   :  { %v2068_v43 = vrot.slane %v2021_v5, %v5141_v39  ;;  %v2145_v25 = vadd.f32 %v2144_v13, %v2143_v9  ;;  %v2172_v47 = vadd.f32 %v2171_v2, %v2170_v30  ;;  %v2116_v59 = vmul.f32 %v2048_v10, %v4457_v29  ;;  %v1210_v2 = vld [vmem:[%s4966_s1] sm:$0xff] }
 0x174   :  { %v2119_v6 = vmul.f32 %v2056_v34, %v4464_v19  ;;  %v2146_v21 = vsel %vm1424_vm15, %v2115_v28, 0.0  ;;  %v2173_v0 = vsel %vm1456_vm1, %v2112_v40, 0.0  ;;  %v2118_v51 = vmul.f32 %v2052_v62, %v4462_v55 }
 0x175   :  { %v2121_v15 = vmul.f32 %v2060_v53, %v4469_v7  ;;  %v2147_v38 = vadd.f32 %v2146_v21, %v2145_v25  ;;  %v2174_v60 = vadd.f32 %v2173_v0, %v2172_v47  ;;  %v2148_v48 = vsel %vm1424_vm15, %v2117_v50, 0.0 }
 0x176   :  { %v2175_v5 = vsel %vm1456_vm1, %v2114_v20, 0.0  ;;  %vm1768_vm3 = vcmask 121856   ;;  %v2072_v10 = vrot.slane %v2023_v22, %v5141_v39  ;;  %vm2930_vm5 = vmmov 0  }
 0x177   :  { %v2149_v9 = vadd.f32 %v2148_v48, %v2147_v38  ;;  %v2176_v30 = vadd.f32 %v2175_v5, %v2174_v60  ;;  %v4986_v28 = vmov 0.0   ;;  %v2120_v62 = vmul.f32 %v2056_v34, %v4466_v12 }
 0x178   :  { %2712 = vmatprep.mubr.msk.f32.mxu1 %vm2930_vm5, %v4986_v28  ;;  %2726 = vmatprep.mubr.msk.f32.mxu0 %vm2930_vm5, %v4986_v28  ;;  %v2123_v25 = vmul.f32 %v2064_v45, %v4473_v56  ;;  %v2150_v40 = vsel %vm1424_vm15, %v2119_v6, 0.0  ;;  %v2177_v47 = vsel %vm1456_vm1, %v2116_v59, 0.0  ;;  %v2076_v22 = vrot.slane %v4624_v11, %v5141_v39 }
 0x179   :  { %2713 = vmatmul.mubr.msk.f32.vlgmr.msra.gmra.mrb[0].mxu1 %vm1768_vm3, %v1767_v33  ;;  %v2122_v20 = vmul.f32 %v2060_v53, %v4471_v3  ;;  %v2151_v50 = vadd.f32 %v2150_v40, %v2149_v9  ;;  %v2178_v13 = vadd.f32 %v2177_v47, %v2176_v30  ;;  %v2125_v34 = vmul.f32 %v2068_v43, %v4477_v16 }
 0x17a   :  { %2719 = vmatprep.mubr.msk.f32.mxu1 %vm2930_vm5, %v4986_v28  ;;  %v2152_v59 = vsel %vm1424_vm15, %v2121_v15, 0.0  ;;  %v2179_v6 = vsel %vm1456_vm1, %v2118_v51, 0.0  ;;  %v1221_v21 = vrot.slane %v1210_v2, %v5135_v31  ;;  %v2080_v53 = vrot.slane %v4641_v17, %v5141_v39 }
 0x17b   :  { %v5150_v0 = vcombine.high %v4624_v11, %v4624_v11  ;;  %v2153_v60 = vadd.f32 %v2152_v59, %v2151_v50  ;;  %v2180_v33 = vadd.f32 %v2179_v6, %v2178_v13  ;;  %v2124_v48 = vmul.f32 %v2064_v45, %v4475_v44 }
 0x17c   :  { %v2127_v5 = vmul.f32 %v2072_v10, %v4481_v18  ;;  %v2154_v15 = vsel %vm1424_vm15, %v2123_v25, 0.0  ;;  %v2181_v51 = vsel %vm1456_vm1, %v2120_v62, 0.0  ;;  %v2126_v9 = vmul.f32 %v2068_v43, %v4479_v27 }
 0x17d   :  { %v2084_v38 = vrot.slane %v5150_v0, %v5141_v39  ;;  %v2129_v30 = vmul.f32 %v2076_v22, %v4485_v46  ;;  %v2155_v17 = vadd.f32 %v2154_v15, %v2153_v60  ;;  %v2182_v40 = vadd.f32 %v2181_v51, %v2180_v33 }
 0x17e   :  { %v2156_v47 = vsel %vm1424_vm15, %v2125_v34, 0.0  ;;  %v2183_v11 = vsel %vm1456_vm1, %v2122_v20, 0.0  ;;  %v1214_v50 = vcombine.high %v1210_v2, %v1210_v2  ;;  %v1229_v13 = vcombine.high %v1221_v21, %v1221_v21 }
 0x17f   :  { %v2088_v45 = vrot.slane %v2024_v57, %v5141_v39  ;;  %v2128_v59 = vmul.f32 %v2072_v10, %v4483_v24  ;;  %v2157_v6 = vadd.f32 %v2156_v47, %v2155_v17  ;;  %v2184_v25 = vadd.f32 %v2183_v11, %v2182_v40 }
 0x180   :  { %v2130_v62 = vmul.f32 %v2076_v22, %v4487_v32  ;;  %v2131_v43 = vmul.f32 %v2080_v53, %v4491_v14  ;;  %v2158_v0 = vsel %vm1424_vm15, %v2127_v5, 0.0  ;;  %v2185_v60 = vsel %vm1456_vm1, %v2124_v48, 0.0 }
 0x181   :  { %v2133_v34 = vmul.f32 %v2084_v38, %v4497_v4  ;;  %v2159_v33 = vadd.f32 %v2158_v0, %v2157_v6  ;;  %v2186_v20 = vadd.f32 %v2185_v60, %v2184_v25  ;;  %v1237_v2 = vrot.slane %v1221_v21, %v5135_v31 }
 0x182   :  { %v2160_v57 = vsel %vm1424_vm15, %v2129_v30, 0.0  ;;  %v2187_v10 = vsel %vm1456_vm1, %v2126_v9, 0.0  ;;  %v1228_v15 = vrot.slane %v1214_v50, %v5135_v31  ;;  %v1251_v22 = vrot.slane %v1229_v13, %v5135_v31  ;;  %v1211_v9 = vld [vmem:[%s4966_s1 + $0x8] sm:$0xff] }
 0x183   :  { %v2161_v51 = vadd.f32 %v2160_v57, %v2159_v33  ;;  %v2188_v17 = vadd.f32 %v2187_v10, %v2186_v20  ;;  %v2132_v5 = vmul.f32 %v2080_v53, %v4493_v58  ;;  %v2134_v48 = vmul.f32 %v2084_v38, %v4499_v8 }
 0x184   :  { %v2162_v40 = vsel %vm1424_vm15, %v2131_v43, 0.0  ;;  %v2189_v47 = vsel %vm1456_vm1, %v2128_v59, 0.0  ;;  %v2135_v21 = vmul.f32 %v2088_v45, %v4508_v1  ;;  %v1259_v50 = vcombine.high %v1237_v2, %v1237_v2 }
 0x185   :  { %v2163_v11 = vadd.f32 %v2162_v40, %v2161_v51  ;;  %v2190_v30 = vadd.f32 %v2189_v47, %v2188_v17  ;;  %v2164_v13 = vsel %vm1424_vm15, %v2133_v34, 0.0  ;;  %v2191_v6 = vsel %vm1456_vm1, %v2130_v62, 0.0 }
 0x186   :  { %v1230_v53 = vcombine.high %v1228_v15, %v1228_v15  ;;  %v1261_v25 = vcombine.high %v1251_v22, %v1251_v22  ;;  %v1315_v43 = vrot.slane %v1237_v2, %v5141_v39  ;;  %v1319_v59 = vrot.slane %v1251_v22, %v5141_v39 }
 0x187   :  { %v2165_v38 = vadd.f32 %v2164_v13, %v2163_v11  ;;  %v2192_v0 = vadd.f32 %v2191_v6, %v2190_v30  ;;  %v2136_v60 = vmul.f32 %v2088_v45, %v4510_v52  ;;  %v2193_v33 = vsel %vm1456_vm1, %v2132_v5, 0.0 }
 0x188   :  { %v1263_v20 = vcombine.high %v1211_v9, %v1211_v9  ;;  %v2166_v57 = vsel %vm1424_vm15, %v2135_v21, 0.0  ;;  %v1244_v34 = vrot.slane %v1228_v15, %v5135_v31  ;;  %v1323_v62 = vrot.slane %v1259_v50, %v5141_v39 }
 0x189   :  { %v2194_v10 = vadd.f32 %v2193_v33, %v2192_v0  ;;  %v2195_v51 = vsel %vm1456_vm1, %v2134_v48, 0.0  ;;  %v1258_v17 = vrot.slane %v1230_v53, %v5135_v31  ;;  %v1270_v2 = vrot.slane %v1211_v9, %v5135_v31  ;;  %v4753_v9 = vld [vmem:[%s4966_s1 + $0x30] sm:$0xff] }
 0x18a   :  { %v1327_v22 = vrot.slane %v1261_v25, %v5141_v39  ;;  %v2167_v40 = vadd.f32 %v2166_v57, %v2165_v38  ;;  %v1392_v5 = vmul.f32 %v1315_v43, %v4431_v37  ;;  %v1394_v47 = vmul.f32 %v1319_v59, %v4435_v54 }
 0x18b   :  { %v2196_v45 = vadd.f32 %v2195_v51, %v2194_v10  ;;  %v2197_v21 = vsel %vm1456_vm1, %v2136_v60, 0.0  ;;  %v1277_v15 = vrot.slane %v1263_v20, %v5135_v31  ;;  %v1260_v30 = vcombine.high %v1244_v34, %v1244_v34  ;;  %v2200_v51 = vld [vmem:[#allocation5 + $0x10] sm:$0xff] }
 0x18c   :  { %v1331_v48 = vrot.slane %v1244_v34, %v5141_v39  ;;  %v1396_v50 = vmul.f32 %v1323_v62, %v4439_v63  ;;  %v1262_v13 = vcombine.high %v1258_v17, %v1258_v17  ;;  %v1278_v6 = vcombine.high %v1270_v2, %v1270_v2  ;;  %v5153_v34 = vld [vmem:[#allocation25_spill] sm:$0xff] }
 0x18d   :  { %v2198_v11 = vadd.f32 %v2197_v21, %v2196_v45  ;;  %v1335_v53 = vrot.slane %v1258_v17, %v5141_v39  ;;  %v1393_v25 = vmul.f32 %v1315_v43, %v4433_v23  ;;  %v1398_v0 = vmul.f32 %v1327_v22, %v4443_v49 }
 0x18e   :  { %v1425_v60 = vsel %vm1424_vm15, %v1392_v5, 0.0  ;;  %v1426_v33 = vsel %vm1424_vm15, %v1394_v47, 0.0  ;;  %v1286_v20 = vrot.slane %v1270_v2, %v5135_v31  ;;  %v1395_v57 = vmul.f32 %v1319_v59, %v4437_v36  ;;  %v5151_v5 = vld [vmem:[#allocation24_spill] sm:$0xff] }
 0x18f   :  { %v2745_v38 = vpack.c.bf16 %v2198_v11, %v2167_v40  ;;  %v1427_v10 = vadd.f32 %v1426_v33, %v1425_v60  ;;  %v1279_v43 = vcombine.high %v1277_v15, %v1277_v15  ;;  %v1339_v17 = vrot.slane %v1260_v30, %v5141_v39 }
 0x190   :  { %v1400_v40 = vmul.f32 %v1331_v48, %v5146_v41  ;;  %v1428_v45 = vsel %vm1424_vm15, %v1396_v50, 0.0  ;;  %v1293_v2 = vrot.slane %v1277_v15, %v5135_v31  ;;  %v1300_v59 = vrot.slane %v1278_v6, %v5135_v31 }
 0x191   :  { %2747 = vmatpush3.bf16.msk.msra.mxu0 %vm4632_vm2, %v2745_v38  ;;  %v1397_v47 = vmul.f32 %v1323_v62, %v5151_v5  ;;  %v1429_v21 = vadd.f32 %v1428_v45, %v1427_v10  ;;  %v1343_v11 = vrot.slane %v1262_v13, %v5141_v39  ;;  %v5152_v38 = vld [vmem:[#allocation27_spill] sm:$0xff]  ;;  %v1430_v33 = vsel %vm1424_vm15, %v1398_v0, 0.0 }
 0x192   :  { %2748 = vmatprep.subr.bf16.mxu0 %v5149_v42  ;;  %v1402_v60 = vmul.f32 %v1335_v53, %v5152_v38  ;;  %v1457_v30 = vsel %vm1456_vm1, %v1393_v25, 0.0  ;;  %v1308_v50 = vcombine.high %v1286_v20, %v1286_v20  ;;  %v1399_v42 = vmul.f32 %v1327_v22, %v5153_v34 }
 0x193   :  { %v1431_v28 = vadd.f32 %v1430_v33, %v1429_v21  ;;  %v1458_v15 = vsel %vm1456_vm1, %v1395_v57, 0.0  ;;  %v1347_v6 = vrot.slane %v1286_v20, %v5141_v39  ;;  %v1404_v62 = vmul.f32 %v1339_v17, %v4459_v35 }
 0x194   :  { %2727 = vmatmul.mubr.msk.f32.vlgmr.msra.gmra.mrb[0].mxu0 %vm1768_vm3, %v2200_v51  ;;  %v1432_v13 = vsel %vm1424_vm15, %v1400_v40, 0.0  ;;  %v1459_v10 = vadd.f32 %v1458_v15, %v1457_v30  ;;  %v5154_v45 = vmov 0.0   ;;  %v1310_v0 = vcombine.high %v1300_v59, %v1300_v59 }
 0x195   :  { %2733 = vmatprep.mubr.msk.f32.mxu0 %vm2930_vm5, %v5154_v45  ;;  %v1401_v25 = vmul.f32 %v1331_v48, %v4449_v61  ;;  %v1433_v51 = vadd.f32 %v1432_v13, %v1431_v28  ;;  %v1460_v38 = vsel %vm1456_vm1, %v1397_v47, 0.0  ;;  %v1351_v22 = vrot.slane %v1300_v59, %v5141_v39 }
 0x196   :  { %v1406_v57 = vmul.f32 %v1343_v11, %v4464_v19  ;;  %v1434_v20 = vsel %vm1424_vm15, %v1402_v60, 0.0  ;;  %v1461_v21 = vadd.f32 %v1460_v38, %v1459_v10  ;;  %v1307_v33 = vrot.slane %v1279_v43, %v5135_v31 }
 0x197   :  { %v1403_v40 = vmul.f32 %v1335_v53, %v4457_v29  ;;  %v1435_v30 = vadd.f32 %v1434_v20, %v1433_v51  ;;  %v1462_v15 = vsel %vm1456_vm1, %v1399_v42, 0.0  ;;  %v1355_v45 = vrot.slane %v1308_v50, %v5141_v39 }
 0x198   :  { %v1408_v28 = vmul.f32 %v1347_v6, %v4469_v7  ;;  %v1436_v48 = vsel %vm1424_vm15, %v1404_v62, 0.0  ;;  %v1463_v47 = vadd.f32 %v1462_v15, %v1461_v21  ;;  %v1309_v59 = vcombine.high %v1293_v2, %v1293_v2 }
 0x199   :  { %v1405_v13 = vmul.f32 %v1339_v17, %v4462_v55  ;;  %v1437_v19 = vadd.f32 %v1436_v48, %v1435_v30  ;;  %v1464_v38 = vsel %vm1456_vm1, %v1401_v25, 0.0  ;;  %v1359_v43 = vrot.slane %v1310_v0, %v5141_v39 }
 0x19a   :  { %v1410_v53 = vmul.f32 %v1351_v22, %v4473_v56  ;;  %v1438_v60 = vsel %vm1424_vm15, %v1406_v57, 0.0  ;;  %v1465_v42 = vadd.f32 %v1464_v38, %v1463_v47  ;;  %v1363_v50 = vrot.slane %v1293_v2, %v5141_v39 }
 0x19b   :  { %v1407_v10 = vmul.f32 %v1343_v11, %v4466_v12  ;;  %v1439_v51 = vadd.f32 %v1438_v60, %v1437_v19  ;;  %v1466_v62 = vsel %vm1456_vm1, %v1403_v40, 0.0  ;;  %v1412_v20 = vmul.f32 %v1355_v45, %v4477_v16 }
 0x19c   :  { %v1440_v17 = vsel %vm1424_vm15, %v1408_v28, 0.0  ;;  %v1467_v21 = vadd.f32 %v1466_v62, %v1465_v42  ;;  %v2290_v0 = vrot.slane %v4753_v9, %v5135_v31  ;;  %v1311_v25 = vcombine.high %v1307_v33, %v1307_v33 }
 0x19d   :  { %v1409_v30 = vmul.f32 %v1347_v6, %v4471_v3  ;;  %v1441_v57 = vadd.f32 %v1440_v17, %v1439_v51  ;;  %v1468_v15 = vsel %vm1456_vm1, %v1405_v13, 0.0  ;;  %v1367_v2 = vrot.slane %v1307_v33, %v5141_v39 }
 0x19e   :  { %v1414_v19 = vmul.f32 %v1359_v43, %v4481_v18  ;;  %v1442_v11 = vsel %vm1424_vm15, %v1410_v53, 0.0  ;;  %v1469_v40 = vadd.f32 %v1468_v15, %v1467_v21  ;;  %v1371_v48 = vrot.slane %v1309_v59, %v5141_v39 }
 0x19f   :  { %v1411_v28 = vmul.f32 %v1351_v22, %v4475_v44  ;;  %v1443_v47 = vadd.f32 %v1442_v11, %v1441_v57  ;;  %v1470_v38 = vsel %vm1456_vm1, %v1407_v10, 0.0  ;;  %v1416_v60 = vmul.f32 %v1363_v50, %v4485_v46 }
 0x1a0   :  { %v1444_v6 = vsel %vm1424_vm15, %v1412_v20, 0.0  ;;  %v1471_v42 = vadd.f32 %v1470_v38, %v1469_v40  ;;  %v2298_v13 = vcombine.high %v2290_v0, %v2290_v0  ;;  %v1375_v33 = vrot.slane %v1311_v25, %v5141_v39 }
 0x1a1   :  { %v1413_v51 = vmul.f32 %v1355_v45, %v4479_v27  ;;  %v1445_v62 = vadd.f32 %v1444_v6, %v1443_v47  ;;  %v1472_v53 = vsel %vm1456_vm1, %v1409_v30, 0.0  ;;  %v1418_v59 = vmul.f32 %v1367_v2, %v4491_v14 }
 0x1a2   :  { %v1446_v22 = vsel %vm1424_vm15, %v1414_v19, 0.0  ;;  %v1473_v17 = vadd.f32 %v1472_v53, %v1471_v42  ;;  %v2306_v10 = vrot.slane %v2290_v0, %v5135_v31  ;;  %v1415_v21 = vmul.f32 %v1359_v43, %v4483_v24 }
 0x1a3   :  { %v1447_v57 = vadd.f32 %v1446_v22, %v1445_v62  ;;  %v1474_v20 = vsel %vm1456_vm1, %v1411_v28, 0.0  ;;  %v5155_v25 = vcombine.high %v4753_v9, %v4753_v9  ;;  %v1417_v15 = vmul.f32 %v1363_v50, %v4487_v32 }
 0x1a4   :  { %v1448_v30 = vsel %vm1424_vm15, %v1416_v60, 0.0  ;;  %v1475_v11 = vadd.f32 %v1474_v20, %v1473_v17  ;;  %v2320_v19 = vrot.slane %v2298_v13, %v5135_v31  ;;  %v1419_v40 = vmul.f32 %v1367_v2, %v4493_v58 }
 0x1a5   :  { %v2297_v45 = vrot.slane %v5155_v25, %v5135_v31  ;;  %v1420_v0 = vmul.f32 %v1371_v48, %v4497_v4  ;;  %v1449_v43 = vadd.f32 %v1448_v30, %v1447_v57  ;;  %v1476_v47 = vsel %vm1456_vm1, %v1413_v51, 0.0 }
 0x1a6   :  { %v1421_v28 = vmul.f32 %v1371_v48, %v4499_v8  ;;  %v1450_v38 = vsel %vm1424_vm15, %v1418_v59, 0.0  ;;  %v1477_v9 = vadd.f32 %v1476_v47, %v1475_v11  ;;  %v2328_v6 = vcombine.high %v2306_v10, %v2306_v10 }
 0x1a7   :  { %v1422_v50 = vmul.f32 %v1375_v33, %v4508_v1  ;;  %v1451_v42 = vadd.f32 %v1450_v38, %v1449_v43  ;;  %v1478_v60 = vsel %vm1456_vm1, %v1415_v21, 0.0  ;;  %v2299_v62 = vcombine.high %v2297_v45, %v2297_v45  ;;  %v2693_v21 = vld [vmem:[%s4966_s1 + $0x38] sm:$0xff] }
 0x1a8   :  { %v1479_v13 = vadd.f32 %v1478_v60, %v1477_v9  ;;  %v2330_v53 = vcombine.high %v2320_v19, %v2320_v19  ;;  %v2384_v2 = vrot.slane %v2306_v10, %v5141_v39  ;;  %v2388_v22 = vrot.slane %v2320_v19, %v5141_v39 }
 0x1a9   :  { %v1423_v51 = vmul.f32 %v1375_v33, %v4510_v52  ;;  %v1452_v48 = vsel %vm1424_vm15, %v1420_v0, 0.0  ;;  %v1480_v59 = vsel %vm1456_vm1, %v1417_v15, 0.0  ;;  %v2313_v17 = vrot.slane %v2297_v45, %v5135_v31 }
 0x1aa   :  { %v1453_v57 = vadd.f32 %v1452_v48, %v1451_v42  ;;  %v1481_v20 = vadd.f32 %v1480_v59, %v1479_v13  ;;  %v2392_v25 = vrot.slane %v2328_v6, %v5141_v39  ;;  %v1454_v10 = vsel %vm1424_vm15, %v1422_v50, 0.0 }
 0x1ab   :  { %v1482_v30 = vsel %vm1456_vm1, %v1419_v40, 0.0  ;;  %v2327_v33 = vrot.slane %v2299_v62, %v5135_v31  ;;  %v2339_v11 = vrot.slane %v2693_v21, %v5135_v31  ;;  %v2396_v15 = vrot.slane %v2330_v53, %v5141_v39 }
 0x1ac   :  { %v1483_v19 = vadd.f32 %v1482_v30, %v1481_v20  ;;  %v2461_v45 = vmul.f32 %v2384_v2, %v4431_v37  ;;  %v2463_v0 = vmul.f32 %v2388_v22, %v4435_v54  ;;  %v1484_v43 = vsel %vm1456_vm1, %v1421_v28, 0.0 }
 0x1ad   :  { %v1486_v47 = vsel %vm1456_vm1, %v1423_v51, 0.0  ;;  %v2329_v38 = vcombine.high %v2313_v17, %v2313_v17  ;;  %v2332_v9 = vcombine.high %v2693_v21, %v2693_v21  ;;  %v1455_v6 = vadd.f32 %v1454_v10, %v1453_v57 }
 0x1ae   :  { %v1485_v50 = vadd.f32 %v1484_v43, %v1483_v19  ;;  %v2400_v40 = vrot.slane %v2313_v17, %v5141_v39  ;;  %v2465_v42 = vmul.f32 %v2392_v25, %v4439_v63  ;;  %v2331_v60 = vcombine.high %v2327_v33, %v2327_v33 }
 0x1af   :  { %v2347_v62 = vcombine.high %v2339_v11, %v2339_v11  ;;  %v2355_v13 = vrot.slane %v2339_v11, %v5135_v31  ;;  %v2404_v37 = vrot.slane %v2327_v33, %v5141_v39  ;;  %v2467_v54 = vmul.f32 %v2396_v15, %v4443_v49 }
 0x1b0   :  { %v1487_v53 = vadd.f32 %v1486_v47, %v1485_v50  ;;  %v2493_v28 = vsel %vm1424_vm15, %v2461_v45, 0.0  ;;  %v2494_v51 = vsel %vm1424_vm15, %v2463_v0, 0.0  ;;  %v2462_v48 = vmul.f32 %v2384_v2, %v4433_v23  ;;  %v5156_v2 = vld [vmem:[#allocation27_spill] sm:$0xff] }
 0x1b1   :  { %v2464_v59 = vmul.f32 %v2388_v22, %v4437_v36  ;;  %v2495_v17 = vadd.f32 %v2494_v51, %v2493_v28  ;;  %v2408_v63 = vrot.slane %v2329_v38, %v5141_v39  ;;  %v2469_v20 = vmul.f32 %v2400_v40, %v5146_v41  ;;  %v1488_v41 = vld [vmem:[#allocation5] sm:$0xff] }
 0x1b2   :  { %v2741_v57 = vpack.c.bf16 %v1487_v53, %v1455_v6  ;;  %v2496_v21 = vsel %vm1424_vm15, %v2465_v42, 0.0  ;;  %v2346_v10 = vrot.slane %v2332_v9, %v5135_v31  ;;  %v2369_v49 = vrot.slane %v2347_v62, %v5135_v31 }
 0x1b3   :  { %v2466_v30 = vmul.f32 %v2392_v25, %v5151_v5  ;;  %v2497_v33 = vadd.f32 %v2496_v21, %v2495_v17  ;;  %v2377_v23 = vcombine.high %v2355_v13, %v2355_v13  ;;  %v2412_v36 = vrot.slane %v2331_v60, %v5141_v39 }
 0x1b4   :  { %2743 = vmatpush3.bf16.msk.msra.mxu1 %vm4632_vm2, %v2741_v57  ;;  %v2471_v22 = vmul.f32 %v2404_v37, %v5156_v2  ;;  %v2498_v11 = vsel %vm1424_vm15, %v2467_v54, 0.0  ;;  %v2468_v19 = vmul.f32 %v2396_v15, %v5153_v34  ;;  %v2524_v0 = vsel %vm1456_vm1, %v2462_v48, 0.0  ;;  %v5157_v15 = vld [vmem:[#allocation28_spill] sm:$0xff] }
 0x1b5   :  { %v2499_v45 = vadd.f32 %v2498_v11, %v2497_v33  ;;  %v2525_v43 = vsel %vm1456_vm1, %v2464_v59, 0.0  ;;  %v2416_v5 = vrot.slane %v2355_v13, %v5141_v39  ;;  %v2473_v25 = vmul.f32 %v2408_v63, %v4459_v35 }
 0x1b6   :  { %v2500_v47 = vsel %vm1424_vm15, %v2469_v20, 0.0  ;;  %v2526_v38 = vadd.f32 %v2525_v43, %v2524_v0  ;;  %v2379_v9 = vcombine.high %v2369_v49, %v2369_v49  ;;  %v2470_v6 = vmul.f32 %v2400_v40, %v4449_v61 }
 0x1b7   :  { %v2501_v50 = vadd.f32 %v2500_v47, %v2499_v45  ;;  %v2527_v42 = vsel %vm1456_vm1, %v2466_v30, 0.0  ;;  %2720 = vmatmul.mubr.msk.f32.vlgmr.msra.gmra.mrb[0].mxu1 %vm1768_vm3, %v1488_v41  ;;  %v2420_v34 = vrot.slane %v2369_v49, %v5141_v39  ;;  %v2475_v60 = vmul.f32 %v2412_v36, %v5157_v15 }
 0x1b8   :  { %v2502_v62 = vsel %vm1424_vm15, %v2471_v22, 0.0  ;;  %v2528_v13 = vadd.f32 %v2527_v42, %v2526_v38  ;;  %v2348_v53 = vcombine.high %v2346_v10, %v2346_v10  ;;  %v2472_v35 = vmul.f32 %v2404_v37, %v4457_v29 }
 0x1b9   :  { %v2503_v54 = vadd.f32 %v2502_v62, %v2501_v50  ;;  %v2529_v28 = vsel %vm1456_vm1, %v2468_v19, 0.0  ;;  %v2424_v61 = vrot.slane %v2377_v23, %v5141_v39  ;;  %v2477_v40 = vmul.f32 %v2416_v5, %v4469_v7 }
 0x1ba   :  { %v2504_v51 = vsel %vm1424_vm15, %v2473_v25, 0.0  ;;  %v2530_v48 = vadd.f32 %v2529_v28, %v2528_v13  ;;  %v2362_v59 = vrot.slane %v2346_v10, %v5135_v31  ;;  %v2474_v17 = vmul.f32 %v2408_v63, %v4462_v55 }
 0x1bb   :  { %v2505_v57 = vadd.f32 %v2504_v51, %v2503_v54  ;;  %v2531_v20 = vsel %vm1456_vm1, %v2470_v6, 0.0  ;;  %v2428_v21 = vrot.slane %v2379_v9, %v5141_v39  ;;  %v2479_v29 = vmul.f32 %v2420_v34, %v4473_v56 }
 0x1bc   :  { %v2506_v37 = vsel %vm1424_vm15, %v2475_v60, 0.0  ;;  %v2532_v49 = vadd.f32 %v2531_v20, %v2530_v48  ;;  %v2376_v30 = vrot.slane %v2348_v53, %v5135_v31  ;;  %v2476_v7 = vmul.f32 %v2412_v36, %v4466_v12 }
 0x1bd   :  { %v2507_v33 = vadd.f32 %v2506_v37, %v2505_v57  ;;  %v2533_v23 = vsel %vm1456_vm1, %v2472_v35, 0.0  ;;  %v2432_v10 = vrot.slane %v2362_v59, %v5141_v39  ;;  %v2481_v55 = vmul.f32 %v2424_v61, %v4477_v16 }
 0x1be   :  { %v2508_v63 = vsel %vm1424_vm15, %v2477_v40, 0.0  ;;  %v2534_v2 = vadd.f32 %v2533_v23, %v2532_v49  ;;  %v2378_v22 = vcombine.high %v2362_v59, %v2362_v59  ;;  %v2478_v56 = vmul.f32 %v2416_v5, %v4471_v3 }
 0x1bf   :  { %v2509_v11 = vadd.f32 %v2508_v63, %v2507_v33  ;;  %v2535_v41 = vsel %vm1456_vm1, %v2474_v17, 0.0  ;;  %v2436_v31 = vrot.slane %v2376_v30, %v5141_v39  ;;  %v2483_v12 = vmul.f32 %v2428_v21, %v4481_v18  ;;  %v2648_v63 = vld [vmem:[%s4969_s4] sm:$0xff]  ;;  %s2932_s4 = smov [#allocation7]  }
 0x1c0   :  { %v2510_v36 = vsel %vm1424_vm15, %v2479_v29, 0.0  ;;  %v2536_v19 = vadd.f32 %v2535_v41, %v2534_v2  ;;  %v2480_v45 = vmul.f32 %v2420_v34, %v4475_v44  ;;  %v2537_v16 = vsel %vm1456_vm1, %v2476_v7, 0.0  ;;  %v2655_v41 = vld [vmem:[%s4970_s5] sm:$0xff]  ;;  %s2672_s26 = sshll.u32 %s2932_s4, 4  ;;  %s2673_s26 = int_to_ptr.vmem [resolvable:$true] %s2672_s26 }
 0x1c1   :  { %v2511_v0 = vadd.f32 %v2510_v36, %v2509_v11  ;;  %v2380_v43 = vcombine.high %v2376_v30, %v2376_v30  ;;  %v2485_v25 = vmul.f32 %v2432_v10, %v4485_v46  ;;  %v2512_v3 = vsel %vm1424_vm15, %v2481_v55, 0.0  ;;  %v2556_v30 = vld [vmem:[#allocation5 + $0x18] sm:$0xff]  ;;  %s2894_s5 = scalar_lea.vmem %s2673_s26, 128  ;;  %p2899_p3 = scmp.lt.s32.totalorder %s2673_s26, %s2673_s26 }
 0x1c2   :  { %v2538_v5 = vadd.f32 %v2537_v16, %v2536_v19  ;;  %v2440_v47 = vrot.slane %v2378_v22, %v5141_v39  ;;  %v2482_v38 = vmul.f32 %v2424_v61, %v4479_v27  ;;  %v2539_v18 = vsel %vm1456_vm1, %v2478_v56, 0.0  ;;  %p2895_p2 = scmp.ne.s32.totalorder %s2673_s26, %s2894_s5  ;;  %p2900_p4 = scmp.lt.s32.totalorder %s2894_s5, %s2894_s5 }
 0x1c3   :  { %v2513_v9 = vadd.f32 %v2512_v3, %v2511_v0  ;;  %v2487_v6 = vmul.f32 %v2436_v31, %v4491_v14  ;;  %v2514_v44 = vsel %vm1424_vm15, %v2483_v12, 0.0  ;;  %v2484_v42 = vmul.f32 %v2428_v21, %v4483_v24 }
 0x1c4   :  { %v2540_v50 = vadd.f32 %v2539_v18, %v2538_v5  ;;  %v2541_v46 = vsel %vm1456_vm1, %v2480_v45, 0.0  ;;  %v2444_v15 = vrot.slane %v2380_v43, %v5141_v39  ;;  %v2516_v60 = vsel %vm1424_vm15, %v2485_v25, 0.0  ;;  %p2901_p5 = por %p2900_p4, %p2899_p3 }
 0x1c5   :  { %v2515_v34 = vadd.f32 %v2514_v44, %v2513_v9  ;;  %v2486_v27 = vmul.f32 %v2432_v10, %v4487_v32  ;;  %v2489_v13 = vmul.f32 %v2440_v47, %v4497_v4  ;;  %v2543_v14 = vsel %vm1456_vm1, %v2482_v38, 0.0 }
 0x1c6   :  { %v2542_v62 = vadd.f32 %v2541_v46, %v2540_v50  ;;  %v2518_v35 = vsel %vm1424_vm15, %v2487_v6, 0.0  ;;  %v2488_v24 = vmul.f32 %v2436_v31, %v4493_v58  ;;  %v2545_v61 = vsel %vm1456_vm1, %v2484_v42, 0.0  ;;  %p2902_p6 = pnand %p2901_p5, %p2895_p2 }
 0x1c7   :  { %v2517_v53 = vadd.f32 %v2516_v60, %v2515_v34  ;;  %v2490_v39 = vmul.f32 %v2440_v47, %v4499_v8  ;;  %v2491_v51 = vmul.f32 %v2444_v15, %v4508_v1  ;;  %v2520_v32 = vsel %vm1424_vm15, %v2489_v13, 0.0 }
 0x1c8   :  { %v2544_v54 = vadd.f32 %v2543_v14, %v2542_v62  ;;  %v2547_v4 = vsel %vm1456_vm1, %v2486_v27, 0.0  ;;  %v2492_v17 = vmul.f32 %v2444_v15, %v4510_v52  ;;  %v2549_v57 = vsel %vm1456_vm1, %v2488_v24, 0.0 }
 0x1c9   :  { %v2519_v28 = vadd.f32 %v2518_v35, %v2517_v53  ;;  %v2522_v58 = vsel %vm1424_vm15, %v2491_v51, 0.0  ;;  %v2551_v21 = vsel %vm1456_vm1, %v2490_v39, 0.0 }
 0x1ca   :  { %v2546_v40 = vadd.f32 %v2545_v61, %v2544_v54  ;;  %v2553_v8 = vsel %vm1456_vm1, %v2492_v17, 0.0 }
 0x1cb   :  { %v2521_v48 = vadd.f32 %v2520_v32, %v2519_v28 }
 0x1cc   :  { %v2548_v59 = vadd.f32 %v2547_v4, %v2546_v40 }
 0x1cd   :  { %v2523_v29 = vadd.f32 %v2522_v58, %v2521_v48 }
 0x1ce   :  { %v2550_v20 = vadd.f32 %v2549_v57, %v2548_v59 }
 0x1d0   :  { %v2552_v37 = vadd.f32 %v2551_v21, %v2550_v20 }
 0x1d2   :  { %v2554_v1 = vadd.f32 %v2553_v8, %v2552_v37 }
 0x1d4   :  { %v2749_v49 = vpack.c.bf16 %v2554_v1, %v2523_v29 }
 0x1d6   :  { %2751 = vmatpush3.bf16.msk.msra.mxu0 %vm4632_vm2, %v2749_v49 }
 0x1d9   :  { %2734 = vmatmul.mubr.msk.f32.vlgmr.msra.gmra.mrb[0].mxu0 %vm1768_vm3, %v2556_v30 }
 0x28a   :  { %v1918_v52 = vpop.f32.mrb[0].mxu1 }
 0x28b   :  { %v2721_v7 = vpop.f32.mrb[1].mxu1 }
 0x2ac   :  { %v2629_v33 = vpop.f32.mrb[0].mxu0 }
 0x2ad   :  { %v2752_v23 = vadd.f32 %v2629_v33, %v1918_v52  ;;  %v2735_v10 = vpop.f32.mrb[1].mxu0 }
 0x2af   :  { %v2634_v55 = vsel %vm1424_vm15, %v2752_v23, 0.0 }
 0x2b0   :  { %2635 = vadd.xlane.f32.xlu0 %v2634_v55 }
 0x2c6   :  { %2651 = vperm.xlu0 %2768, %v2648_v63  }
 0x33d   :  { %v2636_v2 = vpop.xlane.xlu0 %2635 }
 0x33e   :  { %v2638_v22 = vmul.f32 0.015625, %v2636_v2 }
 0x340   :  { %v2639_v26 = vsub.f32 %v2752_v23, %v2638_v22 }
 0x342   :  { %v2640_v56 = vmul.f32 %v2639_v26, %v2639_v26 }
 0x344   :  { %v2641_v11 = vsel %vm1424_vm15, %v2640_v56, 0.0 }
 0x345   :  { %2642 = vadd.xlane.f32.xlu1 %v2641_v11  ;;  %v2652_v0 = vpop.permute.xlu0 %2651 }
 0x356   :  { %2658 = vperm.xlu1 %2769, %v2655_v41  }
 0x3d2   :  { %v2643_v31 = vpop.xlane.xlu1 %2642 }
 0x3d3   :  { %v2644_v12 = vmul.f32 0.015625, %v2643_v31 }
 0x3d5   :  { %v2645_v36 = vadd.f32 1e-05, %v2644_v12 }
 0x3d6   :  { %v2659_v43 = vpop.permute.xlu1 %2658 }
 0x3d7   :  { %2848 = vrsqrt.f32 %v2645_v36 }
 0x3e1   :  { %v2849_v19 = vpop.eup %2848 }
 0x3e2   :  { %v2647_v45 = vmul.f32 %v2849_v19, %v2639_v26 }
 0x3e4   :  { %v2654_v16 = vmul.f32 %v2652_v0, %v2647_v45 }
 0x3e6   :  { %v2661_v25 = vadd.f32 %v2659_v43, %v2654_v16 }
 0x3e8   :  { %vm2662_vm6 = vcmp.gt.f32.partialorder %v2661_v25, 0.0  ;;  %v2663_v3 = vmul.f32 0.2, %v2661_v25 }
 0x3ea   :  { %v2664_v5 = vsel %vm2662_vm6, %v2661_v25, %v2663_v3 }
 0x3eb   :  { %2665 = vst.msk [vmem:[#allocation7] sm:$0xff] %vm1424_vm15, %v2664_v5 }
 0x3ec   :  { %2905 = shalt.err (!%p2902_p6)
}
 0x3ed   :  { %s2906_s28 = scalar_lea.hbm %s4971_s6, 128 }
 0x3ee   :  { %p2907_p7 = scmp.ne.s32.totalorder %s4971_s6, %s2906_s28  ;;  %p2910_p8 = scmp.lt.u32.totalorder %s2906_s28, %s4971_s6 }
 0x3f0   :  { %p2912_p9 = pnand %p2910_p8, %p2907_p7 }
 0x3f2   :  { %2915 = shalt.err (!%p2912_p9)
}
 0x3f3   :  { %2675 = dma.vmem_to_hbm [thread:$0]  %s2673_s26, 128, %s4971_s6, [#allocation4]  }
 0x3f4   :  { %2920 = dma.done.wait [#allocation4], 128  }
 0x3f5   :  { %2921 = vsyncadd [#allocation4], 4294967168 }
 0x3f6   :  { %2679 = vsyncpa [#allocation3], 1 }
 0x3f7   :  { %2680 = vsyncpa [#allocation6], 1 }
 0x3f8   :  { %2681 = vsyncpa [#allocation4], 1 }

</bundles_post_ra>
